<compile_context>
chip_gen: v7x
topology: tpu7x:2x2x1
jax: 0.10.0
libtpu: 0.0.40
codegen_flags: <defaults>
</compile_context>

<pallas_src>
import functools

import jax
import jax.numpy as jnp
from jax import lax
from jax.experimental import pallas as pl
from jax.experimental.pallas import tpu as pltpu


# --------------------------- conv plan (host side) --------------------------- #

def _conv3x3_plan(h, w, stride):
    """Shift-trick plan for a 3x3 / pad=1 conv over an (h, w) image.

    The padded image is row-flattened (channels last); the 3x3 conv becomes 9
    matmuls over row-shifted views.  For stride 2 the padded image is first split
    into 4 even/odd parity planes so every tap is again a pure row shift.  The conv
    output lives in a zero-bordered padded-flat layout with row stride wop = wo+2,
    which is exactly what the following stride-1 conv wants as input.
    """
    if stride == 1:
        hp, wp = h + 2, w + 2
        ho, wo = h, w
        n_planes = 1
        taps = [(0, kh * wp + kw) for kh in range(3) for kw in range(3)]
        sc_tap = (0, wp + 1)            # rows of x itself (1x1 shortcut conv)

        def prep(x_nhwc):
            n, _, _, c = x_nhwc.shape
            xp = jnp.pad(x_nhwc, ((0, 0), (1, 1), (1, 1), (0, 0)))
            return xp.reshape(n, 1, hp * wp, c)

    elif stride == 2:
        assert h % 2 == 0 and w % 2 == 0, "stride-2 path assumes even H, W"
        hp, wpad = h + 2, w + 4          # extra right pad makes every tap a shift
        hh, wh = hp // 2, wpad // 2
        ho, wo = h // 2, w // 2
        n_planes = 4
        taps = [(2 * (kh % 2) + (kw % 2), (kh // 2) * wh + (kw // 2))
                for kh in range(3) for kw in range(3)]
        sc_tap = (3, 0)                  # xpad[1::2, 1::2] == x[::2, ::2]

        def prep(x_nhwc):
            n, _, _, c = x_nhwc.shape
            xp = jnp.pad(x_nhwc, ((0, 0), (1, 1), (1, 3), (0, 0)))
            x4 = xp.reshape(n, hh, 2, wh, 2, c)
            x4 = jnp.transpose(x4, (0, 2, 4, 1, 3, 5))
            return x4.reshape(n, 4, hh * wh, c)
    else:
        raise NotImplementedError(stride)

    wop = wo + 2                          # padded output row stride
    mout = (ho + 2) * wop                 # rows of the padded-flat a1 plane
    out_off = wop + 1                     # first real-pixel row in that plane
    qi = (ho - 1) * wop + wo              # contiguous rows actually computed

    ro = jnp.arange(qi, dtype=jnp.int32) + out_off
    ii = ro // wop
    jj = ro - ii * wop
    mask = ((ii >= 1) & (ii <= ho) & (jj >= 1) & (jj <= wo))
    mask = mask.astype(jnp.float32)[:, None]          # (qi, 1): 1 on real pixels

    return dict(prep=prep, taps=taps, sc_tap=sc_tap, n_planes=n_planes,
                ho=ho, wo=wo, wop=wop, qi=qi, out_off=out_off, mout=mout,
                mask=mask)


# ------------------------------ fused kernel -------------------------------- #

def _make_block_kernel(*, taps1, taps2, qi, out_off, mout, planes,
                       sc_tap, use_se, inv_hw, out_rows):
    """conv1+BN1+ReLU -> conv2+BN2 [-> SE gate] + shortcut(+conv/BN) + add + ReLU."""

    def kernel(*refs):
        it = iter(refs)
        x_ref, w1_ref, b1_ref = next(it), next(it), next(it)
        w2_ref, b2_ref, m_ref = next(it), next(it), next(it)
        wsc_ref = bsc_ref = sw1_ref = sw2_ref = None
        if sc_tap is not None:
            wsc_ref, bsc_ref = next(it), next(it)
        if use_se:
            sw1_ref, sw2_ref = next(it), next(it)
        o_ref = next(it)
        a1_scr = next(it)

        mask = m_ref[...]                                   # (qi, 1) f32

        # ---- conv1 + BN1 + ReLU: 9 shifted bf16 matmuls, f32 accumulation ----
        acc1 = None
        for t, (p, off) in enumerate(taps1):
            d = jnp.dot(x_ref[0, p, off:off + qi, :], w1_ref[t],
                        preferred_element_type=jnp.float32)
            acc1 = d if acc1 is None else acc1 + d
        y1 = jnp.maximum(acc1 + b1_ref[...], 0.0) * mask    # (qi, planes)

        # a1 stays in VMEM (zero-bordered padded plane); no HBM round trip.
        # Borders zeroed once, interior written once (no full-tile zero store).
        a1_scr[0:out_off, :] = jnp.zeros((out_off, planes), a1_scr.dtype)
        a1_scr[out_off:out_off + qi, :] = y1
        a1_scr[out_off + qi:mout, :] = jnp.zeros(
            (mout - out_off - qi, planes), a1_scr.dtype)

        # ---- conv2 + BN2 over the VMEM-resident a1 ----
        acc2 = None
        for t, off in enumerate(taps2):
            lhs = a1_scr[off:off + qi, :].astype(jnp.bfloat16)   # bf16 MXU feed
            d = jnp.dot(lhs, w2_ref[t], preferred_element_type=jnp.float32)
            acc2 = d if acc2 is None else acc2 + d
        y2 = (acc2 + b2_ref[...]) * mask                     # (qi, planes)

        # ---- squeeze-excite gate (fully fused; mask already zeroed fake rows) ----
        if use_se:
            mean = jnp.sum(y2, axis=0, keepdims=True) * inv_hw          # (1, C)
            hmid = jnp.maximum(jnp.dot(mean, sw1_ref[...],
                                       preferred_element_type=jnp.float32), 0.0)
            gate = jax.nn.sigmoid(jnp.dot(hmid, sw2_ref[...],
                                          preferred_element_type=jnp.float32))
            y2 = y2 * gate

        # ---- shortcut (fused 1x1 conv + BN, or identity) ----
        if sc_tap is not None:
            sp, soff = sc_tap
            sc = (jnp.dot(x_ref[0, sp, soff:soff + qi, :], wsc_ref[...],
                          preferred_element_type=jnp.float32)
                  + bsc_ref[...]) * mask
        else:
            sc = x_ref[0, 0, out_off:out_off + qi, :].astype(jnp.float32)

        out = jnp.maximum(y2 + sc, 0.0)

        # Single store of the computed rows; only the 2 trailing (cropped-away)
        # rows get an explicit tiny zero store.
        o_ref[0, 0:qi, :] = out.astype(o_ref.dtype)
        o_ref[0, qi:out_rows, :] = jnp.zeros((out_rows - qi, planes), o_ref.dtype)

    return kernel


# --------------------------------- wrapper ---------------------------------- #

def fuse_bn(bn, eps=1e-5):
    gamma, beta, mean, var = bn
    scale = gamma / jnp.sqrt(var + eps)
    return scale, beta - mean * scale


def basic_block_forward(x_nchw, params, *, stride, use_se):
    # prep in bf16 (halves XLA prep-pass bytes); f32 accumulation stays in-kernel.
    x = jnp.transpose(x_nchw.astype(jnp.bfloat16), (0, 2, 3, 1))     # NHWC bf16
    n, h, w, cin = x.shape
    planes = params["w1_taps"].shape[2]

    plan = _conv3x3_plan(h, w, stride)
    ho, wo, wop = plan["ho"], plan["wo"], plan["wop"]
    qi, out_off, mout = plan["qi"], plan["out_off"], plan["mout"]
    taps2 = [kh * wop + kw for kh in range(3) for kw in range(3)]
    out_rows = ho * wop

    x1 = plan["prep"](x)                                   # (N, P, Min, Cin) bf16
    n_planes_in, min_rows = x1.shape[1], x1.shape[2]

    s1, b1 = fuse_bn(params["bn1"])
    w1 = (params["w1_taps"] * s1[None, None, :]).astype(jnp.bfloat16)
    s2, b2 = fuse_bn(params["bn2"])
    w2 = (params["w2_taps"] * s2[None, None, :]).astype(jnp.bfloat16)

    has_sc_conv = (stride != 1) or (cin != planes)

    in_specs = [
        pl.BlockSpec((1, n_planes_in, min_rows, cin), lambda i: (i, 0, 0, 0)),
        pl.BlockSpec((9, cin, planes), lambda i: (0, 0, 0)),
        pl.BlockSpec((1, planes), lambda i: (0, 0)),
        pl.BlockSpec((9, planes, planes), lambda i: (0, 0, 0)),
        pl.BlockSpec((1, planes), lambda i: (0, 0)),
        pl.BlockSpec((qi, 1), lambda i: (0, 0)),
    ]
    args = [x1, w1, b1.reshape(1, planes).astype(jnp.float32),
            w2, b2.reshape(1, planes).astype(jnp.float32), plan["mask"]]

    if has_sc_conv:
        ssc, bsc = fuse_bn(params["bn_sc"])
        wsc = (params["w_sc"] * ssc[None, :]).astype(jnp.bfloat16)
        in_specs += [pl.BlockSpec((cin, planes), lambda i: (0, 0)),
                     pl.BlockSpec((1, planes), lambda i: (0, 0))]
        args += [wsc, bsc.reshape(1, planes).astype(jnp.float32)]

    if use_se:
        hidden = params["se_w1"].shape[1]
        in_specs += [pl.BlockSpec((planes, hidden), lambda i: (0, 0)),
                     pl.BlockSpec((hidden, planes), lambda i: (0, 0))]
        args += [params["se_w1"].astype(jnp.float32),
                 params["se_w2"].astype(jnp.float32)]

    kernel = _make_block_kernel(
        taps1=plan["taps"], taps2=taps2, qi=qi, out_off=out_off, mout=mout,
        planes=planes, sc_tap=plan["sc_tap"] if has_sc_conv else None,
        use_se=use_se, inv_hw=1.0 / float(ho * wo), out_rows=out_rows)

    out_flat = pl.pallas_call(
        kernel,
        out_shape=jax.ShapeDtypeStruct((n, out_rows, planes), jnp.float32),
        grid_spec=pltpu.PrefetchScalarGridSpec(
            num_scalar_prefetch=0,
            grid=(n,),
            in_specs=in_specs,
            out_specs=pl.BlockSpec((1, out_rows, planes), lambda i: (i, 0, 0)),
            scratch_shapes=[pltpu.VMEM((mout, planes), jnp.float32)]),
        compiler_params=pltpu.CompilerParams(
            dimension_semantics=("parallel",)),
    )(*args)

    # Crop of the 2 garbage columns is fused into the (required) NCHW transpose.
    out = out_flat.reshape(n, ho, wop, planes)[:, :, :wo, :]
    return jnp.transpose(out, (0, 3, 1, 2))                 # NCHW f32


# --------------------------- pure-JAX reference ----------------------------- #

def ref_forward(x, p, *, stride, use_se, eps=1e-5):
    def conv(v, wgt, s, pad):
        return lax.conv_general_dilated(
            v, wgt, (s, s), [(pad, pad), (pad, pad)],
            dimension_numbers=("NCHW", "OIHW", "NCHW"))

    def bn(v, b):
        g, bt, m, var = b
        inv = g / jnp.sqrt(var + eps)
        return v * inv[None, :, None, None] + (bt - m * inv)[None, :, None, None]

    out = jax.nn.relu(bn(conv(x, p["w1_oihw"], stride, 1), p["bn1"]))
    out = bn(conv(out, p["w2_oihw"], 1, 1), p["bn2"])
    if use_se:
        y = out.mean(axis=(2, 3))
        s = jax.nn.sigmoid(jax.nn.relu(y @ p["se_w1"]) @ p["se_w2"])
        out = out * s[:, :, None, None]
    cin, planes = x.shape[1], out.shape[1]
    if stride != 1 or cin != planes:
        sc = bn(conv(x, p["w_sc_oihw"], stride, 0), p["bn_sc"])
    else:
        sc = x
    return jax.nn.relu(out + sc)


# ----------------------------------- main ------------------------------------ #

if __name__ == "__main__":
    def bn_params(k, c):
        k1, k2, k3, k4 = jax.random.split(k, 4)
        return (jax.random.uniform(k1, (c,), minval=0.5, maxval=1.5),
                0.1 * jax.random.normal(k2, (c,)),
                0.1 * jax.random.normal(k3, (c,)),
                jax.random.uniform(k4, (c,), minval=0.5, maxval=1.5))

    def round_bf16(a):
        return a.astype(jnp.bfloat16).astype(jnp.float32)

    def build_params(key, cin, planes):
        ks = jax.random.split(key, 8)
        w1_oihw = round_bf16(0.1 * jax.random.normal(ks[0], (planes, cin, 3, 3), jnp.float32))
        w2_oihw = round_bf16(0.1 * jax.random.normal(ks[1], (planes, planes, 3, 3), jnp.float32))
        w_sc_oihw = round_bf16(0.1 * jax.random.normal(ks[2], (planes, cin, 1, 1), jnp.float32))
        hidden = max(planes // 16, 1)                      # SELayer reduction=16
        se_w1 = round_bf16(0.3 * jax.random.normal(ks[3], (planes, hidden), jnp.float32))
        se_w2 = round_bf16(0.3 * jax.random.normal(ks[4], (hidden, planes), jnp.float32))
        return {
            # tap / matmul layouts consumed by the Pallas kernel
            "w1_taps": jnp.transpose(w1_oihw, (2, 3, 1, 0)).reshape(9, cin, planes),
            "w2_taps": jnp.transpose(w2_oihw, (2, 3, 1, 0)).reshape(9, planes, planes),
            "w_sc": w_sc_oihw[:, :, 0, 0].T,
            # original OIHW layouts for the reference
            "w1_oihw": w1_oihw, "w2_oihw": w2_oihw, "w_sc_oihw": w_sc_oihw,
            "se_w1": se_w1, "se_w2": se_w2,
            "bn1": bn_params(ks[5], planes),
            "bn2": bn_params(ks[6], planes),
            "bn_sc": bn_params(ks[7], planes),
        }

    configs = [
        dict(name="stride2+SE+conv_shortcut", n=2, cin=8, planes=32,
             hw=16, stride=2, use_se=True),
        dict(name="stride1+identity_shortcut", n=2, cin=16, planes=16,
             hw=16, stride=1, use_se=False),
    ]

    key = jax.random.PRNGKey(0)
    for cfg in configs:
        key, kp, kx = jax.random.split(key, 3)
        params = build_params(kp, cfg["cin"], cfg["planes"])
        x = round_bf16(jax.random.normal(
            kx, (cfg["n"], cfg["cin"], cfg["hw"], cfg["hw"]), jnp.float32))

        fwd = jax.jit(functools.partial(basic_block_forward,
                                        stride=cfg["stride"],
                                        use_se=cfg["use_se"]))
        out = jax.block_until_ready(fwd(x, params))
        ref = jax.block_until_ready(
            ref_forward(x, params, stride=cfg["stride"], use_se=cfg["use_se"]))

        ho = cfg["hw"] // cfg["stride"]
        assert out.shape == ref.shape == (cfg["n"], cfg["planes"], ho, ho), out.shape
        max_err = float(jnp.max(jnp.abs(out - ref)))
        mean_err = float(jnp.mean(jnp.abs(out - ref)))
        mean_ref = float(jnp.mean(jnp.abs(ref)))
        # bf16 activations/weights with f32 accumulation vs. an f32 reference:
        # tight-ish mean-relative check (catches tap/offset bugs) + max-abs guard.
        assert mean_err < 2e-2 + 2e-2 * mean_ref, \
            f"{cfg['name']}: mean err {mean_err} vs mean|ref| {mean_ref}"
        assert max_err < 1.5e-1, f"{cfg['name']}: max err {max_err}"

    print("KERNEL_OK")
</pallas_src>

<mosaic_0001>
module attributes {stable_mosaic.version = 11 : i64} {
  func.func @kernel(%arg0: i32, %arg1: memref<1x4x90x8xbf16, #tpu.memory_space<vmem>>, %arg2: memref<9x8x32xbf16, #tpu.memory_space<vmem>>, %arg3: memref<1x32xf32, #tpu.memory_space<vmem>>, %arg4: memref<9x32x32xbf16, #tpu.memory_space<vmem>>, %arg5: memref<1x32xf32, #tpu.memory_space<vmem>>, %arg6: memref<78x1xf32, #tpu.memory_space<vmem>>, %arg7: memref<8x32xbf16, #tpu.memory_space<vmem>>, %arg8: memref<1x32xf32, #tpu.memory_space<vmem>>, %arg9: memref<32x2xf32, #tpu.memory_space<vmem>>, %arg10: memref<2x32xf32, #tpu.memory_space<vmem>>, %arg11: memref<1x80x32xf32, #tpu.memory_space<vmem>>, %arg12: memref<100x32xf32, #tpu.memory_space<vmem>>) attributes {dimension_semantics = [#tpu.dimension_semantics<parallel>], iteration_bounds = array<i64: 2>, scalar_prefetch = 0 : i64, scratch_operands = 1 : i64, tpu.core_type = #tpu.core_type<tc>, window_params = [{transform_indices = @transform_0, window_bounds = array<i64: 1, 4, 90, 8>}, {pipeline_mode = #tpu.pipeline_mode<synchronous>, transform_indices = @transform_1, window_bounds = array<i64: 9, 8, 32>}, {pipeline_mode = #tpu.pipeline_mode<synchronous>, transform_indices = @transform_2, window_bounds = array<i64: 1, 32>}, {pipeline_mode = #tpu.pipeline_mode<synchronous>, transform_indices = @transform_3, window_bounds = array<i64: 9, 32, 32>}, {pipeline_mode = #tpu.pipeline_mode<synchronous>, transform_indices = @transform_4, window_bounds = array<i64: 1, 32>}, {pipeline_mode = #tpu.pipeline_mode<synchronous>, transform_indices = @transform_5, window_bounds = array<i64: 78, 1>}, {pipeline_mode = #tpu.pipeline_mode<synchronous>, transform_indices = @transform_6, window_bounds = array<i64: 8, 32>}, {pipeline_mode = #tpu.pipeline_mode<synchronous>, transform_indices = @transform_7, window_bounds = array<i64: 1, 32>}, {pipeline_mode = #tpu.pipeline_mode<synchronous>, transform_indices = @transform_8, window_bounds = array<i64: 32, 2>}, {pipeline_mode = #tpu.pipeline_mode<synchronous>, transform_indices = @transform_9, window_bounds = array<i64: 2, 32>}, {transform_indices = @transform_10, window_bounds = array<i64: 1, 80, 32>}]} {
    %c0 = arith.constant 0 : index
    %c0_0 = arith.constant 0 : index
    %0 = vector.load %arg6[%c0, %c0_0] : memref<78x1xf32, #tpu.memory_space<vmem>>, vector<78x1xf32>
    %c0_1 = arith.constant 0 : index
    %c0_2 = arith.constant 0 : index
    %c0_3 = arith.constant 0 : index
    %c0_4 = arith.constant 0 : index
    %1 = vector.load %arg1[%c0_1, %c0_2, %c0_3, %c0_4] : memref<1x4x90x8xbf16, #tpu.memory_space<vmem>>, vector<1x1x78x8xbf16>
    %2 = vector.shape_cast %1 : vector<1x1x78x8xbf16> to vector<78x8xbf16>
    %c0_5 = arith.constant 0 : index
    %c0_6 = arith.constant 0 : index
    %c0_7 = arith.constant 0 : index
    %3 = vector.load %arg2[%c0_5, %c0_6, %c0_7] : memref<9x8x32xbf16, #tpu.memory_space<vmem>>, vector<1x8x32xbf16>
    %4 = vector.shape_cast %3 : vector<1x8x32xbf16> to vector<8x32xbf16>
    %cst = arith.constant dense<0.000000e+00> : vector<78x32xf32>
    %5 = tpu.matmul %2, %4, %cst {dimension_numbers = #tpu.dot_dimension_numbers<[1], [0], [0], [1], [0, 0, 1, 1], [], []>} : vector<78x8xbf16>, vector<8x32xbf16>, vector<78x32xf32> -> vector<78x32xf32>
    %c0_8 = arith.constant 0 : index
    %c1 = arith.constant 1 : index
    %c0_9 = arith.constant 0 : index
    %c0_10 = arith.constant 0 : index
    %6 = vector.load %arg1[%c0_8, %c1, %c0_9, %c0_10] : memref<1x4x90x8xbf16, #tpu.memory_space<vmem>>, vector<1x1x78x8xbf16>
    %7 = vector.shape_cast %6 : vector<1x1x78x8xbf16> to vector<78x8xbf16>
    %c1_11 = arith.constant 1 : index
    %c0_12 = arith.constant 0 : index
    %c0_13 = arith.constant 0 : index
    %8 = vector.load %arg2[%c1_11, %c0_12, %c0_13] : memref<9x8x32xbf16, #tpu.memory_space<vmem>>, vector<1x8x32xbf16>
    %9 = vector.shape_cast %8 : vector<1x8x32xbf16> to vector<8x32xbf16>
    %cst_14 = arith.constant dense<0.000000e+00> : vector<78x32xf32>
    %10 = tpu.matmul %7, %9, %cst_14 {dimension_numbers = #tpu.dot_dimension_numbers<[1], [0], [0], [1], [0, 0, 1, 1], [], []>} : vector<78x8xbf16>, vector<8x32xbf16>, vector<78x32xf32> -> vector<78x32xf32>
    %11 = arith.addf %5, %10 : vector<78x32xf32>
    %c0_15 = arith.constant 0 : index
    %c0_16 = arith.constant 0 : index
    %c1_17 = arith.constant 1 : index
    %c0_18 = arith.constant 0 : index
    %12 = vector.load %arg1[%c0_15, %c0_16, %c1_17, %c0_18] : memref<1x4x90x8xbf16, #tpu.memory_space<vmem>>, vector<1x1x78x8xbf16>
    %13 = vector.shape_cast %12 : vector<1x1x78x8xbf16> to vector<78x8xbf16>
    %c2 = arith.constant 2 : index
    %c0_19 = arith.constant 0 : index
    %c0_20 = arith.constant 0 : index
    %14 = vector.load %arg2[%c2, %c0_19, %c0_20] : memref<9x8x32xbf16, #tpu.memory_space<vmem>>, vector<1x8x32xbf16>
    %15 = vector.shape_cast %14 : vector<1x8x32xbf16> to vector<8x32xbf16>
    %cst_21 = arith.constant dense<0.000000e+00> : vector<78x32xf32>
    %16 = tpu.matmul %13, %15, %cst_21 {dimension_numbers = #tpu.dot_dimension_numbers<[1], [0], [0], [1], [0, 0, 1, 1], [], []>} : vector<78x8xbf16>, vector<8x32xbf16>, vector<78x32xf32> -> vector<78x32xf32>
    %17 = arith.addf %11, %16 : vector<78x32xf32>
    %c0_22 = arith.constant 0 : index
    %c2_23 = arith.constant 2 : index
    %c0_24 = arith.constant 0 : index
    %c0_25 = arith.constant 0 : index
    %18 = vector.load %arg1[%c0_22, %c2_23, %c0_24, %c0_25] : memref<1x4x90x8xbf16, #tpu.memory_space<vmem>>, vector<1x1x78x8xbf16>
    %19 = vector.shape_cast %18 : vector<1x1x78x8xbf16> to vector<78x8xbf16>
    %c3 = arith.constant 3 : index
    %c0_26 = arith.constant 0 : index
    %c0_27 = arith.constant 0 : index
    %20 = vector.load %arg2[%c3, %c0_26, %c0_27] : memref<9x8x32xbf16, #tpu.memory_space<vmem>>, vector<1x8x32xbf16>
    %21 = vector.shape_cast %20 : vector<1x8x32xbf16> to vector<8x32xbf16>
    %cst_28 = arith.constant dense<0.000000e+00> : vector<78x32xf32>
    %22 = tpu.matmul %19, %21, %cst_28 {dimension_numbers = #tpu.dot_dimension_numbers<[1], [0], [0], [1], [0, 0, 1, 1], [], []>} : vector<78x8xbf16>, vector<8x32xbf16>, vector<78x32xf32> -> vector<78x32xf32>
    %23 = arith.addf %17, %22 : vector<78x32xf32>
    %c0_29 = arith.constant 0 : index
    %c3_30 = arith.constant 3 : index
    %c0_31 = arith.constant 0 : index
    %c0_32 = arith.constant 0 : index
    %24 = vector.load %arg1[%c0_29, %c3_30, %c0_31, %c0_32] : memref<1x4x90x8xbf16, #tpu.memory_space<vmem>>, vector<1x1x78x8xbf16>
    %25 = vector.shape_cast %24 : vector<1x1x78x8xbf16> to vector<78x8xbf16>
    %c4 = arith.constant 4 : index
    %c0_33 = arith.constant 0 : index
    %c0_34 = arith.constant 0 : index
    %26 = vector.load %arg2[%c4, %c0_33, %c0_34] : memref<9x8x32xbf16, #tpu.memory_space<vmem>>, vector<1x8x32xbf16>
    %27 = vector.shape_cast %26 : vector<1x8x32xbf16> to vector<8x32xbf16>
    %cst_35 = arith.constant dense<0.000000e+00> : vector<78x32xf32>
    %28 = tpu.matmul %25, %27, %cst_35 {dimension_numbers = #tpu.dot_dimension_numbers<[1], [0], [0], [1], [0, 0, 1, 1], [], []>} : vector<78x8xbf16>, vector<8x32xbf16>, vector<78x32xf32> -> vector<78x32xf32>
    %29 = arith.addf %23, %28 : vector<78x32xf32>
    %c0_36 = arith.constant 0 : index
    %c2_37 = arith.constant 2 : index
    %c1_38 = arith.constant 1 : index
    %c0_39 = arith.constant 0 : index
    %30 = vector.load %arg1[%c0_36, %c2_37, %c1_38, %c0_39] : memref<1x4x90x8xbf16, #tpu.memory_space<vmem>>, vector<1x1x78x8xbf16>
    %31 = vector.shape_cast %30 : vector<1x1x78x8xbf16> to vector<78x8xbf16>
    %c5 = arith.constant 5 : index
    %c0_40 = arith.constant 0 : index
    %c0_41 = arith.constant 0 : index
    %32 = vector.load %arg2[%c5, %c0_40, %c0_41] : memref<9x8x32xbf16, #tpu.memory_space<vmem>>, vector<1x8x32xbf16>
    %33 = vector.shape_cast %32 : vector<1x8x32xbf16> to vector<8x32xbf16>
    %cst_42 = arith.constant dense<0.000000e+00> : vector<78x32xf32>
    %34 = tpu.matmul %31, %33, %cst_42 {dimension_numbers = #tpu.dot_dimension_numbers<[1], [0], [0], [1], [0, 0, 1, 1], [], []>} : vector<78x8xbf16>, vector<8x32xbf16>, vector<78x32xf32> -> vector<78x32xf32>
    %35 = arith.addf %29, %34 : vector<78x32xf32>
    %c0_43 = arith.constant 0 : index
    %c0_44 = arith.constant 0 : index
    %c10 = arith.constant 10 : index
    %c0_45 = arith.constant 0 : index
    %36 = vector.load %arg1[%c0_43, %c0_44, %c10, %c0_45] : memref<1x4x90x8xbf16, #tpu.memory_space<vmem>>, vector<1x1x78x8xbf16>
    %37 = vector.shape_cast %36 : vector<1x1x78x8xbf16> to vector<78x8xbf16>
    %c6 = arith.constant 6 : index
    %c0_46 = arith.constant 0 : index
    %c0_47 = arith.constant 0 : index
    %38 = vector.load %arg2[%c6, %c0_46, %c0_47] : memref<9x8x32xbf16, #tpu.memory_space<vmem>>, vector<1x8x32xbf16>
    %39 = vector.shape_cast %38 : vector<1x8x32xbf16> to vector<8x32xbf16>
    %cst_48 = arith.constant dense<0.000000e+00> : vector<78x32xf32>
    %40 = tpu.matmul %37, %39, %cst_48 {dimension_numbers = #tpu.dot_dimension_numbers<[1], [0], [0], [1], [0, 0, 1, 1], [], []>} : vector<78x8xbf16>, vector<8x32xbf16>, vector<78x32xf32> -> vector<78x32xf32>
    %41 = arith.addf %35, %40 : vector<78x32xf32>
    %c0_49 = arith.constant 0 : index
    %c1_50 = arith.constant 1 : index
    %c10_51 = arith.constant 10 : index
    %c0_52 = arith.constant 0 : index
    %42 = vector.load %arg1[%c0_49, %c1_50, %c10_51, %c0_52] : memref<1x4x90x8xbf16, #tpu.memory_space<vmem>>, vector<1x1x78x8xbf16>
    %43 = vector.shape_cast %42 : vector<1x1x78x8xbf16> to vector<78x8xbf16>
    %c7 = arith.constant 7 : index
    %c0_53 = arith.constant 0 : index
    %c0_54 = arith.constant 0 : index
    %44 = vector.load %arg2[%c7, %c0_53, %c0_54] : memref<9x8x32xbf16, #tpu.memory_space<vmem>>, vector<1x8x32xbf16>
    %45 = vector.shape_cast %44 : vector<1x8x32xbf16> to vector<8x32xbf16>
    %cst_55 = arith.constant dense<0.000000e+00> : vector<78x32xf32>
    %46 = tpu.matmul %43, %45, %cst_55 {dimension_numbers = #tpu.dot_dimension_numbers<[1], [0], [0], [1], [0, 0, 1, 1], [], []>} : vector<78x8xbf16>, vector<8x32xbf16>, vector<78x32xf32> -> vector<78x32xf32>
    %47 = arith.addf %41, %46 : vector<78x32xf32>
    %c0_56 = arith.constant 0 : index
    %c0_57 = arith.constant 0 : index
    %c11 = arith.constant 11 : index
    %c0_58 = arith.constant 0 : index
    %48 = vector.load %arg1[%c0_56, %c0_57, %c11, %c0_58] : memref<1x4x90x8xbf16, #tpu.memory_space<vmem>>, vector<1x1x78x8xbf16>
    %49 = vector.shape_cast %48 : vector<1x1x78x8xbf16> to vector<78x8xbf16>
    %c8 = arith.constant 8 : index
    %c0_59 = arith.constant 0 : index
    %c0_60 = arith.constant 0 : index
    %50 = vector.load %arg2[%c8, %c0_59, %c0_60] : memref<9x8x32xbf16, #tpu.memory_space<vmem>>, vector<1x8x32xbf16>
    %51 = vector.shape_cast %50 : vector<1x8x32xbf16> to vector<8x32xbf16>
    %cst_61 = arith.constant dense<0.000000e+00> : vector<78x32xf32>
    %52 = tpu.matmul %49, %51, %cst_61 {dimension_numbers = #tpu.dot_dimension_numbers<[1], [0], [0], [1], [0, 0, 1, 1], [], []>} : vector<78x8xbf16>, vector<8x32xbf16>, vector<78x32xf32> -> vector<78x32xf32>
    %53 = arith.addf %47, %52 : vector<78x32xf32>
    %c0_62 = arith.constant 0 : index
    %c0_63 = arith.constant 0 : index
    %54 = vector.load %arg3[%c0_62, %c0_63] : memref<1x32xf32, #tpu.memory_space<vmem>>, vector<1x32xf32>
    %55 = vector.broadcast %54 : vector<1x32xf32> to vector<78x32xf32>
    %56 = arith.addf %53, %55 : vector<78x32xf32>
    %cst_64 = arith.constant 0.000000e+00 : f32
    %57 = vector.broadcast %cst_64 : f32 to vector<78x32xf32>
    %58 = arith.maximumf %56, %57 : vector<78x32xf32>
    %59 = vector.broadcast %0 : vector<78x1xf32> to vector<78x32xf32>
    %60 = arith.mulf %58, %59 : vector<78x32xf32>
    %cst_65 = arith.constant 0.000000e+00 : f32
    %61 = vector.broadcast %cst_65 : f32 to vector<11x32xf32>
    %c0_66 = arith.constant 0 : index
    %c0_67 = arith.constant 0 : index
    %62 = vector.load %arg12[%c0_66, %c0_67] : memref<100x32xf32, #tpu.memory_space<vmem>>, vector<11x32xf32>
    tpu.vector_store %arg12[%c0_66, %c0_67], %61 {strides = array<i32>} : memref<100x32xf32, #tpu.memory_space<vmem>>, vector<11x32xf32>,
    %c11_68 = arith.constant 11 : index
    %c0_69 = arith.constant 0 : index
    %63 = vector.load %arg12[%c11_68, %c0_69] : memref<100x32xf32, #tpu.memory_space<vmem>>, vector<78x32xf32>
    tpu.vector_store %arg12[%c11_68, %c0_69], %60 {strides = array<i32>} : memref<100x32xf32, #tpu.memory_space<vmem>>, vector<78x32xf32>,
    %cst_70 = arith.constant 0.000000e+00 : f32
    %64 = vector.broadcast %cst_70 : f32 to vector<11x32xf32>
    %c89 = arith.constant 89 : index
    %c0_71 = arith.constant 0 : index
    %65 = vector.load %arg12[%c89, %c0_71] : memref<100x32xf32, #tpu.memory_space<vmem>>, vector<11x32xf32>
    tpu.vector_store %arg12[%c89, %c0_71], %64 {strides = array<i32>} : memref<100x32xf32, #tpu.memory_space<vmem>>, vector<11x32xf32>,
    %c0_72 = arith.constant 0 : index
    %c0_73 = arith.constant 0 : index
    %66 = vector.load %arg12[%c0_72, %c0_73] : memref<100x32xf32, #tpu.memory_space<vmem>>, vector<78x32xf32>
    %67 = arith.truncf %66 : vector<78x32xf32> to vector<78x32xbf16>
    %c0_74 = arith.constant 0 : index
    %c0_75 = arith.constant 0 : index
    %c0_76 = arith.constant 0 : index
    %68 = vector.load %arg4[%c0_74, %c0_75, %c0_76] : memref<9x32x32xbf16, #tpu.memory_space<vmem>>, vector<1x32x32xbf16>
    %69 = vector.shape_cast %68 : vector<1x32x32xbf16> to vector<32x32xbf16>
    %cst_77 = arith.constant dense<0.000000e+00> : vector<78x32xf32>
    %70 = tpu.matmul %67, %69, %cst_77 {dimension_numbers = #tpu.dot_dimension_numbers<[1], [0], [0], [1], [0, 0, 1, 1], [], []>} : vector<78x32xbf16>, vector<32x32xbf16>, vector<78x32xf32> -> vector<78x32xf32>
    %c1_78 = arith.constant 1 : index
    %c0_79 = arith.constant 0 : index
    %71 = vector.load %arg12[%c1_78, %c0_79] : memref<100x32xf32, #tpu.memory_space<vmem>>, vector<78x32xf32>
    %72 = arith.truncf %71 : vector<78x32xf32> to vector<78x32xbf16>
    %c1_80 = arith.constant 1 : index
    %c0_81 = arith.constant 0 : index
    %c0_82 = arith.constant 0 : index
    %73 = vector.load %arg4[%c1_80, %c0_81, %c0_82] : memref<9x32x32xbf16, #tpu.memory_space<vmem>>, vector<1x32x32xbf16>
    %74 = vector.shape_cast %73 : vector<1x32x32xbf16> to vector<32x32xbf16>
    %cst_83 = arith.constant dense<0.000000e+00> : vector<78x32xf32>
    %75 = tpu.matmul %72, %74, %cst_83 {dimension_numbers = #tpu.dot_dimension_numbers<[1], [0], [0], [1], [0, 0, 1, 1], [], []>} : vector<78x32xbf16>, vector<32x32xbf16>, vector<78x32xf32> -> vector<78x32xf32>
    %76 = arith.addf %70, %75 : vector<78x32xf32>
    %c2_84 = arith.constant 2 : index
    %c0_85 = arith.constant 0 : index
    %77 = vector.load %arg12[%c2_84, %c0_85] : memref<100x32xf32, #tpu.memory_space<vmem>>, vector<78x32xf32>
    %78 = arith.truncf %77 : vector<78x32xf32> to vector<78x32xbf16>
    %c2_86 = arith.constant 2 : index
    %c0_87 = arith.constant 0 : index
    %c0_88 = arith.constant 0 : index
    %79 = vector.load %arg4[%c2_86, %c0_87, %c0_88] : memref<9x32x32xbf16, #tpu.memory_space<vmem>>, vector<1x32x32xbf16>
    %80 = vector.shape_cast %79 : vector<1x32x32xbf16> to vector<32x32xbf16>
    %cst_89 = arith.constant dense<0.000000e+00> : vector<78x32xf32>
    %81 = tpu.matmul %78, %80, %cst_89 {dimension_numbers = #tpu.dot_dimension_numbers<[1], [0], [0], [1], [0, 0, 1, 1], [], []>} : vector<78x32xbf16>, vector<32x32xbf16>, vector<78x32xf32> -> vector<78x32xf32>
    %82 = arith.addf %76, %81 : vector<78x32xf32>
    %c10_90 = arith.constant 10 : index
    %c0_91 = arith.constant 0 : index
    %83 = vector.load %arg12[%c10_90, %c0_91] : memref<100x32xf32, #tpu.memory_space<vmem>>, vector<78x32xf32>
    %84 = arith.truncf %83 : vector<78x32xf32> to vector<78x32xbf16>
    %c3_92 = arith.constant 3 : index
    %c0_93 = arith.constant 0 : index
    %c0_94 = arith.constant 0 : index
    %85 = vector.load %arg4[%c3_92, %c0_93, %c0_94] : memref<9x32x32xbf16, #tpu.memory_space<vmem>>, vector<1x32x32xbf16>
    %86 = vector.shape_cast %85 : vector<1x32x32xbf16> to vector<32x32xbf16>
    %cst_95 = arith.constant dense<0.000000e+00> : vector<78x32xf32>
    %87 = tpu.matmul %84, %86, %cst_95 {dimension_numbers = #tpu.dot_dimension_numbers<[1], [0], [0], [1], [0, 0, 1, 1], [], []>} : vector<78x32xbf16>, vector<32x32xbf16>, vector<78x32xf32> -> vector<78x32xf32>
    %88 = arith.addf %82, %87 : vector<78x32xf32>
    %c11_96 = arith.constant 11 : index
    %c0_97 = arith.constant 0 : index
    %89 = vector.load %arg12[%c11_96, %c0_97] : memref<100x32xf32, #tpu.memory_space<vmem>>, vector<78x32xf32>
    %90 = arith.truncf %89 : vector<78x32xf32> to vector<78x32xbf16>
    %c4_98 = arith.constant 4 : index
    %c0_99 = arith.constant 0 : index
    %c0_100 = arith.constant 0 : index
    %91 = vector.load %arg4[%c4_98, %c0_99, %c0_100] : memref<9x32x32xbf16, #tpu.memory_space<vmem>>, vector<1x32x32xbf16>
    %92 = vector.shape_cast %91 : vector<1x32x32xbf16> to vector<32x32xbf16>
    %cst_101 = arith.constant dense<0.000000e+00> : vector<78x32xf32>
    %93 = tpu.matmul %90, %92, %cst_101 {dimension_numbers = #tpu.dot_dimension_numbers<[1], [0], [0], [1], [0, 0, 1, 1], [], []>} : vector<78x32xbf16>, vector<32x32xbf16>, vector<78x32xf32> -> vector<78x32xf32>
    %94 = arith.addf %88, %93 : vector<78x32xf32>
    %c12 = arith.constant 12 : index
    %c0_102 = arith.constant 0 : index
    %95 = vector.load %arg12[%c12, %c0_102] : memref<100x32xf32, #tpu.memory_space<vmem>>, vector<78x32xf32>
    %96 = arith.truncf %95 : vector<78x32xf32> to vector<78x32xbf16>
    %c5_103 = arith.constant 5 : index
    %c0_104 = arith.constant 0 : index
    %c0_105 = arith.constant 0 : index
    %97 = vector.load %arg4[%c5_103, %c0_104, %c0_105] : memref<9x32x32xbf16, #tpu.memory_space<vmem>>, vector<1x32x32xbf16>
    %98 = vector.shape_cast %97 : vector<1x32x32xbf16> to vector<32x32xbf16>
    %cst_106 = arith.constant dense<0.000000e+00> : vector<78x32xf32>
    %99 = tpu.matmul %96, %98, %cst_106 {dimension_numbers = #tpu.dot_dimension_numbers<[1], [0], [0], [1], [0, 0, 1, 1], [], []>} : vector<78x32xbf16>, vector<32x32xbf16>, vector<78x32xf32> -> vector<78x32xf32>
    %100 = arith.addf %94, %99 : vector<78x32xf32>
    %c20 = arith.constant 20 : index
    %c0_107 = arith.constant 0 : index
    %101 = vector.load %arg12[%c20, %c0_107] : memref<100x32xf32, #tpu.memory_space<vmem>>, vector<78x32xf32>
    %102 = arith.truncf %101 : vector<78x32xf32> to vector<78x32xbf16>
    %c6_108 = arith.constant 6 : index
    %c0_109 = arith.constant 0 : index
    %c0_110 = arith.constant 0 : index
    %103 = vector.load %arg4[%c6_108, %c0_109, %c0_110] : memref<9x32x32xbf16, #tpu.memory_space<vmem>>, vector<1x32x32xbf16>
    %104 = vector.shape_cast %103 : vector<1x32x32xbf16> to vector<32x32xbf16>
    %cst_111 = arith.constant dense<0.000000e+00> : vector<78x32xf32>
    %105 = tpu.matmul %102, %104, %cst_111 {dimension_numbers = #tpu.dot_dimension_numbers<[1], [0], [0], [1], [0, 0, 1, 1], [], []>} : vector<78x32xbf16>, vector<32x32xbf16>, vector<78x32xf32> -> vector<78x32xf32>
    %106 = arith.addf %100, %105 : vector<78x32xf32>
    %c21 = arith.constant 21 : index
    %c0_112 = arith.constant 0 : index
    %107 = vector.load %arg12[%c21, %c0_112] : memref<100x32xf32, #tpu.memory_space<vmem>>, vector<78x32xf32>
    %108 = arith.truncf %107 : vector<78x32xf32> to vector<78x32xbf16>
    %c7_113 = arith.constant 7 : index
    %c0_114 = arith.constant 0 : index
    %c0_115 = arith.constant 0 : index
    %109 = vector.load %arg4[%c7_113, %c0_114, %c0_115] : memref<9x32x32xbf16, #tpu.memory_space<vmem>>, vector<1x32x32xbf16>
    %110 = vector.shape_cast %109 : vector<1x32x32xbf16> to vector<32x32xbf16>
    %cst_116 = arith.constant dense<0.000000e+00> : vector<78x32xf32>
    %111 = tpu.matmul %108, %110, %cst_116 {dimension_numbers = #tpu.dot_dimension_numbers<[1], [0], [0], [1], [0, 0, 1, 1], [], []>} : vector<78x32xbf16>, vector<32x32xbf16>, vector<78x32xf32> -> vector<78x32xf32>
    %112 = arith.addf %106, %111 : vector<78x32xf32>
    %c22 = arith.constant 22 : index
    %c0_117 = arith.constant 0 : index
    %113 = vector.load %arg12[%c22, %c0_117] : memref<100x32xf32, #tpu.memory_space<vmem>>, vector<78x32xf32>
    %114 = arith.truncf %113 : vector<78x32xf32> to vector<78x32xbf16>
    %c8_118 = arith.constant 8 : index
    %c0_119 = arith.constant 0 : index
    %c0_120 = arith.constant 0 : index
    %115 = vector.load %arg4[%c8_118, %c0_119, %c0_120] : memref<9x32x32xbf16, #tpu.memory_space<vmem>>, vector<1x32x32xbf16>
    %116 = vector.shape_cast %115 : vector<1x32x32xbf16> to vector<32x32xbf16>
    %cst_121 = arith.constant dense<0.000000e+00> : vector<78x32xf32>
    %117 = tpu.matmul %114, %116, %cst_121 {dimension_numbers = #tpu.dot_dimension_numbers<[1], [0], [0], [1], [0, 0, 1, 1], [], []>} : vector<78x32xbf16>, vector<32x32xbf16>, vector<78x32xf32> -> vector<78x32xf32>
    %118 = arith.addf %112, %117 : vector<78x32xf32>
    %c0_122 = arith.constant 0 : index
    %c0_123 = arith.constant 0 : index
    %119 = vector.load %arg5[%c0_122, %c0_123] : memref<1x32xf32, #tpu.memory_space<vmem>>, vector<1x32xf32>
    %120 = vector.broadcast %119 : vector<1x32xf32> to vector<78x32xf32>
    %121 = arith.addf %118, %120 : vector<78x32xf32>
    %122 = vector.broadcast %0 : vector<78x1xf32> to vector<78x32xf32>
    %123 = arith.mulf %121, %122 : vector<78x32xf32>
    %cst_124 = arith.constant dense<0.000000e+00> : vector<32xf32>
    %124 = vector.multi_reduction <add>, %123, %cst_124 [0] : vector<78x32xf32> to vector<32xf32>
    %125 = vector.shape_cast %124 : vector<32xf32> to vector<1x32xf32>
    %cst_125 = arith.constant 1.562500e-02 : f32
    %126 = vector.broadcast %cst_125 : f32 to vector<1x32xf32>
    %127 = arith.mulf %125, %126 : vector<1x32xf32>
    %c0_126 = arith.constant 0 : index
    %c0_127 = arith.constant 0 : index
    %128 = vector.load %arg9[%c0_126, %c0_127] : memref<32x2xf32, #tpu.memory_space<vmem>>, vector<32x2xf32>
    %cst_128 = arith.constant dense<0.000000e+00> : vector<1x2xf32>
    %129 = tpu.matmul %127, %128, %cst_128 {dimension_numbers = #tpu.dot_dimension_numbers<[1], [0], [0], [1], [0, 0, 1, 1], [], []>} : vector<1x32xf32>, vector<32x2xf32>, vector<1x2xf32> -> vector<1x2xf32>
    %cst_129 = arith.constant 0.000000e+00 : f32
    %130 = vector.broadcast %cst_129 : f32 to vector<1x2xf32>
    %131 = arith.maximumf %129, %130 : vector<1x2xf32>
    %c0_130 = arith.constant 0 : index
    %c0_131 = arith.constant 0 : index
    %132 = vector.load %arg10[%c0_130, %c0_131] : memref<2x32xf32, #tpu.memory_space<vmem>>, vector<2x32xf32>
    %cst_132 = arith.constant dense<0.000000e+00> : vector<1x32xf32>
    %133 = tpu.matmul %131, %132, %cst_132 {dimension_numbers = #tpu.dot_dimension_numbers<[1], [0], [0], [1], [0, 0, 1, 1], [], []>} : vector<1x2xf32>, vector<2x32xf32>, vector<1x32xf32> -> vector<1x32xf32>
    %134 = arith.negf %133 : vector<1x32xf32>
    %135 = math.exp %134 : vector<1x32xf32>
    %cst_133 = arith.constant 1.000000e+00 : f32
    %136 = vector.broadcast %cst_133 : f32 to vector<1x32xf32>
    %137 = arith.addf %136, %135 : vector<1x32xf32>
    %138 = arith.divf %136, %137 : vector<1x32xf32>
    %139 = vector.broadcast %138 : vector<1x32xf32> to vector<78x32xf32>
    %140 = arith.mulf %123, %139 : vector<78x32xf32>
    %c0_134 = arith.constant 0 : index
    %c3_135 = arith.constant 3 : index
    %c0_136 = arith.constant 0 : index
    %c0_137 = arith.constant 0 : index
    %141 = vector.load %arg1[%c0_134, %c3_135, %c0_136, %c0_137] : memref<1x4x90x8xbf16, #tpu.memory_space<vmem>>, vector<1x1x78x8xbf16>
    %142 = vector.shape_cast %141 : vector<1x1x78x8xbf16> to vector<78x8xbf16>
    %c0_138 = arith.constant 0 : index
    %c0_139 = arith.constant 0 : index
    %143 = vector.load %arg7[%c0_138, %c0_139] : memref<8x32xbf16, #tpu.memory_space<vmem>>, vector<8x32xbf16>
    %cst_140 = arith.constant dense<0.000000e+00> : vector<78x32xf32>
    %144 = tpu.matmul %142, %143, %cst_140 {dimension_numbers = #tpu.dot_dimension_numbers<[1], [0], [0], [1], [0, 0, 1, 1], [], []>} : vector<78x8xbf16>, vector<8x32xbf16>, vector<78x32xf32> -> vector<78x32xf32>
    %c0_141 = arith.constant 0 : index
    %c0_142 = arith.constant 0 : index
    %145 = vector.load %arg8[%c0_141, %c0_142] : memref<1x32xf32, #tpu.memory_space<vmem>>, vector<1x32xf32>
    %146 = vector.broadcast %145 : vector<1x32xf32> to vector<78x32xf32>
    %147 = arith.addf %144, %146 : vector<78x32xf32>
    %148 = vector.broadcast %0 : vector<78x1xf32> to vector<78x32xf32>
    %149 = arith.mulf %147, %148 : vector<78x32xf32>
    %150 = arith.addf %140, %149 : vector<78x32xf32>
    %cst_143 = arith.constant 0.000000e+00 : f32
    %151 = vector.broadcast %cst_143 : f32 to vector<78x32xf32>
    %152 = arith.maximumf %150, %151 : vector<78x32xf32>
    %c0_144 = arith.constant 0 : index
    %c0_145 = arith.constant 0 : index
    %c0_146 = arith.constant 0 : index
    %153 = vector.load %arg11[%c0_144, %c0_145, %c0_146] : memref<1x80x32xf32, #tpu.memory_space<vmem>>, vector<1x78x32xf32>
    %154 = vector.shape_cast %153 : vector<1x78x32xf32> to vector<78x32xf32>
    %155 = vector.shape_cast %152 : vector<78x32xf32> to vector<1x78x32xf32>
    tpu.vector_store %arg11[%c0_144, %c0_145, %c0_146], %155 {strides = array<i32>} : memref<1x80x32xf32, #tpu.memory_space<vmem>>, vector<1x78x32xf32>,
    %cst_147 = arith.constant 0.000000e+00 : f32
    %156 = vector.broadcast %cst_147 : f32 to vector<2x32xf32>
    %c0_148 = arith.constant 0 : index
    %c78 = arith.constant 78 : index
    %c0_149 = arith.constant 0 : index
    %157 = vector.load %arg11[%c0_148, %c78, %c0_149] : memref<1x80x32xf32, #tpu.memory_space<vmem>>, vector<1x2x32xf32>
    %158 = vector.shape_cast %157 : vector<1x2x32xf32> to vector<2x32xf32>
    %159 = vector.shape_cast %156 : vector<2x32xf32> to vector<1x2x32xf32>
    tpu.vector_store %arg11[%c0_148, %c78, %c0_149], %159 {strides = array<i32>} : memref<1x80x32xf32, #tpu.memory_space<vmem>>, vector<1x2x32xf32>,
    return
  }
  func.func @transform_0(%arg0: i32) -> (i32, i32, i32, i32) {
    %c0_i32 = arith.constant 0 : i32
    %c0_i32_0 = arith.constant 0 : i32
    %c0_i32_1 = arith.constant 0 : i32
    %c0_i32_2 = arith.constant 0 : i32
    return %arg0, %c0_i32, %c0_i32_0, %c0_i32_1 : i32, i32, i32, i32
  }
  func.func @transform_1(%arg0: i32) -> (i32, i32, i32) {
    %c0_i32 = arith.constant 0 : i32
    %c0_i32_0 = arith.constant 0 : i32
    %c0_i32_1 = arith.constant 0 : i32
    %c0_i32_2 = arith.constant 0 : i32
    return %c0_i32, %c0_i32_0, %c0_i32_1 : i32, i32, i32
  }
  func.func @transform_2(%arg0: i32) -> (i32, i32) {
    %c0_i32 = arith.constant 0 : i32
    %c0_i32_0 = arith.constant 0 : i32
    %c0_i32_1 = arith.constant 0 : i32
    return %c0_i32, %c0_i32_0 : i32, i32
  }
  func.func @transform_3(%arg0: i32) -> (i32, i32, i32) {
    %c0_i32 = arith.constant 0 : i32
    %c0_i32_0 = arith.constant 0 : i32
    %c0_i32_1 = arith.constant 0 : i32
    %c0_i32_2 = arith.constant 0 : i32
    return %c0_i32, %c0_i32_0, %c0_i32_1 : i32, i32, i32
  }
  func.func @transform_4(%arg0: i32) -> (i32, i32) {
    %c0_i32 = arith.constant 0 : i32
    %c0_i32_0 = arith.constant 0 : i32
    %c0_i32_1 = arith.constant 0 : i32
    return %c0_i32, %c0_i32_0 : i32, i32
  }
  func.func @transform_5(%arg0: i32) -> (i32, i32) {
    %c0_i32 = arith.constant 0 : i32
    %c0_i32_0 = arith.constant 0 : i32
    %c0_i32_1 = arith.constant 0 : i32
    return %c0_i32, %c0_i32_0 : i32, i32
  }
  func.func @transform_6(%arg0: i32) -> (i32, i32) {
    %c0_i32 = arith.constant 0 : i32
    %c0_i32_0 = arith.constant 0 : i32
    %c0_i32_1 = arith.constant 0 : i32
    return %c0_i32, %c0_i32_0 : i32, i32
  }
  func.func @transform_7(%arg0: i32) -> (i32, i32) {
    %c0_i32 = arith.constant 0 : i32
    %c0_i32_0 = arith.constant 0 : i32
    %c0_i32_1 = arith.constant 0 : i32
    return %c0_i32, %c0_i32_0 : i32, i32
  }
  func.func @transform_8(%arg0: i32) -> (i32, i32) {
    %c0_i32 = arith.constant 0 : i32
    %c0_i32_0 = arith.constant 0 : i32
    %c0_i32_1 = arith.constant 0 : i32
    return %c0_i32, %c0_i32_0 : i32, i32
  }
  func.func @transform_9(%arg0: i32) -> (i32, i32) {
    %c0_i32 = arith.constant 0 : i32
    %c0_i32_0 = arith.constant 0 : i32
    %c0_i32_1 = arith.constant 0 : i32
    return %c0_i32, %c0_i32_0 : i32, i32
  }
  func.func @transform_10(%arg0: i32) -> (i32, i32, i32) {
    %c0_i32 = arith.constant 0 : i32
    %c0_i32_0 = arith.constant 0 : i32
    %c0_i32_1 = arith.constant 0 : i32
    return %arg0, %c0_i32, %c0_i32_0 : i32, i32, i32
  }
}

</mosaic_0001>

<bundles_post_ra>
// kernel: basic_block_forward.1
= control target key start
LH: loop header
LB: loop body
LE: loop exit
PB: predicated region body
PF: predicated region fallthrough
CT: control target
= control target key end

     0   :  { %s4394_s13 = smov 0   ;;  %s5226_s0 = inlined_call_operand.vmem [shape: bf16[2,4,90,8], index: 0, kind: input, shape index: {}]   ;;  %s5227_s1 = inlined_call_operand.vmem [shape: bf16[9,8,32], index: 1, kind: input, shape index: {}]   ;;  %s5228_s2 = inlined_call_operand.vmem [shape: f32[1,32], index: 2, kind: input, shape index: {}]   ;;  %s5229_s3 = inlined_call_operand.vmem [shape: bf16[9,32,32], index: 3, kind: input, shape index: {}]   ;;  %s5230_s4 = inlined_call_operand.vmem [shape: f32[1,32], index: 4, kind: input, shape index: {}]   ;;  %s5231_s5 = inlined_call_operand.vmem [shape: f32[78,1], index: 5, kind: input, shape index: {}]   ;;  %s5232_s6 = inlined_call_operand.vmem [shape: bf16[8,32], index: 6, kind: input, shape index: {}]   ;;  %s5233_s7 = inlined_call_operand.vmem [shape: f32[1,32], index: 7, kind: input, shape index: {}]   ;;  %s5234_s8 = inlined_call_operand.vmem [shape: f32[32,2], index: 8, kind: input, shape index: {}]   ;;  %s5235_s9 = inlined_call_operand.vmem [shape: f32[2,32], index: 9, kind: input, shape index: {}]   ;;  %s5236_s10 = inlined_call_operand.vmem [shape: f32[2,80,32], index: 10, kind: output, shape index: {}]  }
   0x1 LB: > { %s3393_s14 = sadd.s32 4294967295, %s4333_s13   ;;  %p3397_p0 = scmp.ge.s32.totalorder %s4333_s13, 1  ;;  %s4333_s13 = sphi %s4394_s13, %s20_s13  }
   0x2   : > { %p312_p1 = scmp.lt.s32.totalorder %s4333_s13, 3 }
   0x4   : > { %p313_p2 = pnand %p3397_p0, %p312_p1 }
   0x5   : > { %v3410_v0 = vld [vmem:[%s5227_s1 + $0x4] sm:$0xf] (!%p313_p2)  ;;  %vm436_vm0 = vcmask (!%p313_p2), 1043456   ;;  %p350_p3 = scmp.lt.s32.totalorder (!%p313_p2), %s3393_s14, 1  ;;  %v4335_v1 = vmov (!%p313_p2), 0.0   ;;  %vm4336_vm1 = vmmov (!%p313_p2), 0  }
   0x6   : > { %316 = sbr.rel (%p313_p2) target bundleno = 1288 (0x508), region = 60  ;;  %3786 = vmatprep.subr.bf16.mxu0 (!%p313_p2), %v4335_v1  ;;  %4244 = vmatprep.subr.bf16.mxu1 (!%p313_p2), %v4335_v1  ;;  %v438_v2 = vsel (!%p313_p2), %vm436_vm0, %v3410_v0, 0  ;;  %v3431_v3 = vld [vmem:[%s5227_s1 + $0x8] sm:$0xf] (!%p313_p2)  ;;  %v381_v4 = vld [vmem:[%s5227_s1] sm:$0xf] (!%p313_p2) }
   0x7   : > { %3787 = vmatpush3.bf16.msra.mxu0 (!%p313_p2), %v438_v2  ;;  %4245 = vmatpush3.bf16.msra.mxu1 (!%p313_p2), %v438_v2  ;;  %vm420_vm2 = vcmask (!%p313_p2), 64512   ;;  %v687_v6 = vsel (!%p313_p2), %vm436_vm0, %v3431_v3, 0  ;;  %v554_v8 = vsel (!%p313_p2), %vm436_vm0, %v381_v4, 0  ;;  %v3448_v14 = vld [vmem:[%s5227_s1 + $0xc] sm:$0xf] (!%p313_p2)  ;;  %vm1229_vm4 = vcmask (!%p313_p2), 1046528  }
   0x8   : > { %3788 = vmatprep.mubr.msk.bf16.mxu0 (!%p313_p2), %vm4336_vm1, %v4335_v1  ;;  %3800 = vmatprep.mubr.msk.bf16.mxu1 (!%p313_p2), %vm4336_vm1, %v4335_v1  ;;  %v826_v19 = vsel (!%p313_p2), %vm436_vm0, %v3448_v14, 0  ;;  %vm635_vm3 = vsmask.f32 (!%p313_p2), 7424  ;;  %v3469_v23 = vld [vmem:[%s5227_s1 + $0x10] sm:$0xf] (!%p313_p2)  ;;  %vm1766_vm6 = vcmask (!%p313_p2), 261120  }
   0x9   : > { %3830 = vmatprep.subr.bf16.mxu0 (!%p313_p2), %v4335_v1  ;;  %3808 = vmatprep.subr.bf16.mxu1 (!%p313_p2), %v4335_v1  ;;  %v965_v27 = vsel (!%p313_p2), %vm436_vm0, %v3469_v23, 0  ;;  %v3481_v44 = vld [vmem:[%s5227_s1 + $0x14] sm:$0xf] (!%p313_p2)  ;;  %v3488_v52 = vld [vmem:[%s5227_s1 + $0x18] sm:$0xf] (!%p313_p2)  ;;  %1767 = vst.msk [vmem:[#allocation2] sm:$0xff] (!%p313_p2), %vm1766_vm6, %v4335_v1 }
   0xa   : > { %v1107_v49 = vsel (!%p313_p2), %vm436_vm0, %v3481_v44, 0  ;;  %v1255_v55 = vsel (!%p313_p2), %vm436_vm0, %v3488_v52, 0  ;;  %vm1528_vm5 = vsmask.f32 (!%p313_p2), 6400  ;;  %1781 = vst.msk [vmem:[#allocation2 + $0x59] sm:$0xff] (!%p313_p2), %vm1766_vm6, %v4335_v1  ;;  %vm1768_vm7 = vcmask (!%p313_p2), 256000  }
   0xb   : > { %1769 = vst.msk [vmem:[#allocation2 + $0x8] sm:$0x7] (!%p313_p2), %vm1768_vm7, %v4335_v1  ;;  %1782 = vst.msk [vmem:[#allocation2 + $0x61] sm:$0x7] (!%p313_p2), %vm1768_vm7, %v4335_v1  ;;  %vm1779_vm8 = vcmask (!%p313_p2), 259072   ;;  %vm3068_vm9 = vcmask (!%p313_p2), 1041408  }
   0xc   : > { %vm3064_vm10 = vcmask (!%p313_p2), 15360   ;;  %vm3336_vm11 = vcmask (!%p313_p2), 254976  }
   0xd   : > { %s5238_s14 = smov (!%p350_p3, %s3393_s14), 1 }
   0xe   : > { %s4246_s17 = smul.u32 192, %s5238_s14 }
   0xf   : > { %s4247_s22 = smul.u32 80, %s5238_s14 }
  0x10   : > { %s4426_s24 = scalar_lea.vmem %s5226_s0, %s4246_s17 }
  0x11   : > { %v4262_v5 = vld [vmem:[%s4426_s24 + $0x30] sm:$0xff]   ;;  %v4263_v7 = vld [vmem:[%s4426_s24 + $0x48] sm:$0xff]   ;;  %v4264_v9 = vld [vmem:[%s4426_s24 + $0x38] sm:$0xff]   ;;  %s5168_s26 = scalar_lea.vmem %s5236_s10, %s4247_s22 }
  0x12   : > { %3789 = vmatmul.mubr.msk.bf16.vlgmr.msra.gmra.mrb[0].mxu0 %vm420_vm2, %v4262_v5  ;;  %3801 = vmatmul.mubr.msk.bf16.vlgmr.msra.gmra.mrb[0].mxu1 %vm420_vm2, %v4263_v7  ;;  %v4265_v10 = vld [vmem:[%s4426_s24 + $0x50] sm:$0x7f]   ;;  %v4267_v11 = vld [vmem:[%s4426_s24] sm:$0xff]   ;;  %v4268_v12 = vld [vmem:[%s4426_s24 + $0x8] sm:$0xff]   ;;  %v4337_v5 = vmov 0  }
  0x13   : > { %3831 = vmatpush3.bf16.msra.mxu0 %v687_v6  ;;  %3809 = vmatpush3.bf16.msra.mxu1 %v554_v8  ;;  %v638_v13 = vshll.u32 %v4267_v11, 16  ;;  %v4266_v15 = vld [vmem:[%s4426_s24 + $0x40] sm:$0xff]   ;;  %v636_v16 = vshrl.u32 %v4267_v11, 16  ;;  %v642_v17 = vshll.u32 %v4268_v12, 16  ;;  %v4269_v22 = vld [vmem:[%s4426_s24 + $0x10] sm:$0xff]   ;;  %v646_v25 = vshrl.u32 %v4268_v12, 16 }
  0x14   : > { %3792 = vmatprep.mubr.msk.bf16.mxu0 %vm4336_vm1, %v4335_v1  ;;  %3804 = vmatprep.mubr.msk.bf16.mxu1 %vm4336_vm1, %v4335_v1  ;;  %v649_v26 = vshll.u32 %v4269_v22, 16  ;;  %v4270_v30 = vld [vmem:[%s4426_s24 + $0x18] sm:$0xff]   ;;  %v379_v31 = vld [vmem:[%s4426_s24 + $0x20] sm:$0xf]  ;;  %v653_v33 = vshrl.u32 %v4269_v22, 16  ;;  %v4275_v53 = vld [vmem:[%s4426_s24 + $0x90] sm:$0xff]  }
  0x15   : > { %3852 = vmatprep.subr.bf16.mxu1 %v4335_v1  ;;  %3874 = vmatprep.subr.bf16.mxu0 %v4335_v1  ;;  %v640_v18 = vrot.slane %v638_v13, 1  ;;  %v644_v20 = vrot.slane %v642_v17, 1  ;;  %v656_v34 = vshll.u32 %v4270_v30, 16  ;;  %v629_v35 = vld [vmem:[%s4426_s24 + $0x24] sm:$0xf]  ;;  %v660_v40 = vshrl.u32 %v4270_v30, 16 }
  0x16   : > { %v651_v29 = vrot.slane %v649_v26, 1  ;;  %v3432_v38 = vcombine.low %v379_v31, %v629_v35  ;;  %v380_v45 = vld [vmem:[%s4426_s24 + $0x24] sm:$0x7]  ;;  %v4274_v54 = vld [vmem:[%s4426_s24 + $0x68] sm:$0xff]   ;;  %v4277_v56 = vld [vmem:[%s4426_s24 + $0x98] sm:$0xff]   ;;  %4260 = vset.pattern.permute.xlu0 %v4337_v5  ;;  %4261 = vset.pattern.permute.xlu1 %v4337_v5 }
  0x17   : > { %v641_v21 = vor.u32 %v640_v18, %v636_v16  ;;  %v648_v28 = vor.u32 %v646_v25, %v644_v20  ;;  %v658_v37 = vrot.slane %v656_v34, 1  ;;  %v3425_v46 = vcombine.low %v379_v31, %v380_v45  ;;  %v4273_v50 = vld [vmem:[%s4426_s24 + $0x60] sm:$0xff]   ;;  %v4527_v57 = vld [vmem:[%s4426_s24 + $0x70] sm:$0xff]   ;;  %v4538_v59 = vld [vmem:[%s4426_s24 + $0x78] sm:$0xff]   ;;  %3337 = vst.msk [vmem:[%s5168_s26 + $0x4e] sm:$0x3] %vm3336_vm11, %v4335_v1 }
  0x18   : > { %v655_v36 = vor.u32 %v653_v33, %v651_v29  ;;  %v664_v41 = vshll.u32 %v3432_v38, 16  ;;  %v668_v48 = vshrl.u32 %v3432_v38, 16  ;;  %v4279_v58 = vld [vmem:[%s4426_s24 + $0xa0] sm:$0xff]   ;;  %v1058_v62 = vshll.u32 %v4273_v50, 16  ;;  %v4282_v63 = vld [vmem:[%s4426_s24 + $0xa8] sm:$0xff]   ;;  %v363_v18 = vld [vmem:[%s5231_s5 + $0x10] sm:$0xff] }
  0x19   : > { %v645_v24 = vsel %vm635_vm3, %v641_v21, %v644_v20  ;;  %v652_v32 = vsel %vm635_vm3, %v648_v28, %v651_v29  ;;  %v662_v42 = vor.u32 %v660_v40, %v658_v37  ;;  %v3446_v60 = vld [vmem:[%s4426_s24 + $0x80] sm:$0xf]  ;;  %v3447_v61 = vld [vmem:[%s4426_s24 + $0x84] sm:$0x7]  ;;  %v1062_v2 = vshll.u32 %v4274_v54, 16  ;;  %v362_v13 = vld [vmem:[%s5231_s5 + $0x8] sm:$0xff]  ;;  %1718 = vperm.xlu1 %4261, %v363_v18  }
  0x1a   : > { %3793 = vmatmul.mubr.msk.bf16.gmra.mrb[4].mxu0 %vm420_vm2, %v4264_v9  ;;  %3805 = vmatmul.mubr.msk.bf16.gmra.mrb[4].mxu1 %vm420_vm2, %v4265_v10  ;;  %v659_v39 = vsel %vm635_vm3, %v655_v36, %v658_v37  ;;  %v666_v43 = vrot.slane %v664_v41, 1  ;;  %v3453_v0 = vcombine.low %v3446_v60, %v3447_v61  ;;  %v1056_v3 = vshrl.u32 %v4273_v50, 16  ;;  %v361_v6 = vld [vmem:[%s5231_s5] sm:$0xff]  ;;  %v4283_v9 = vld [vmem:[%s4426_s24 + $0xb0] sm:$0x7f]   ;;  %v364_v31 = vld [vmem:[%s5231_s5 + $0x18] sm:$0xff] }
  0x1b   : > { %3796 = vmatprep.mubr.msk.bf16.mxu0 %vm4336_vm1, %v4335_v1  ;;  %3810 = vmatprep.mubr.msk.bf16.mxu1 %vm4336_vm1, %v4335_v1  ;;  %v1060_v4 = vrot.slane %v1058_v62, 1  ;;  %v1064_v7 = vrot.slane %v1062_v2, 1  ;;  %v3509_v10 = vld [vmem:[%s5227_s1 + $0x1c] sm:$0xf]  ;;  %v1069_v16 = vshll.u32 %v4527_v57, 16  ;;  %v4286_v26 = vld [vmem:[%s4426_s24 + $0x14] sm:$0xff]  }
  0x1c   : > { %v667_v47 = vsel %vm635_vm3, %v662_v42, %v666_v43  ;;  %v670_v51 = vor.u32 %v668_v48, %v666_v43  ;;  %1708 = vperm.xlu0 %4260, %v361_v6   ;;  %v1402_v17 = vsel %vm436_vm0, %v3509_v10, 0  ;;  %v1073_v29 = vshrl.u32 %v4527_v57, 16  ;;  %v3480_v33 = vld [vmem:[%s4426_s24 + $0x84] sm:$0xf]  ;;  %v366_v34 = vld [vmem:[%s5231_s5 + $0x28] sm:$0xff]  ;;  %v4287_v41 = vld [vmem:[%s4426_s24 + $0x1c] sm:$0xff]  }
  0x1d   : > { %v1061_v8 = vor.u32 %v1060_v4, %v1056_v3  ;;  %v1071_v23 = vrot.slane %v1069_v16, 1  ;;  %1723 = vperm.xlu1 %4261, %v364_v31   ;;  %v369_v35 = vld [vmem:[%s5231_s5 + $0x40] sm:$0xff]  ;;  %v1233_v36 = vrot.slane %v4286_v26, 1  ;;  %v3482_v37 = vcombine.low %v3446_v60, %v3480_v33  ;;  %v368_v45 = vld [vmem:[%s5231_s5 + $0x38] sm:$0xff] }
  0x1e   : > { %v1080_v43 = vshrl.u32 %v4538_v59, 16  ;;  %v4290_v60 = vld [vmem:[%s4426_s24 + $0x3c] sm:$0xff]   ;;  %v4291_v10 = vld [vmem:[%s4426_s24 + $0x44] sm:$0xff]   ;;  %v4296_v31 = vld [vmem:[%s4426_s24 + $0x54] sm:$0xff]  }
  0x1f   : > { %v1065_v14 = vsel %vm635_vm3, %v1061_v8, %v1064_v7  ;;  %v1075_v38 = vor.u32 %v1073_v29, %v1071_v23  ;;  %v1084_v44 = vshll.u32 %v3482_v37, 16  ;;  %v1378_v3 = vrot.slane %v4290_v60, 1  ;;  %v4295_v8 = vld [vmem:[%s4426_s24 + $0x14] sm:$0xff]   ;;  %v4298_v29 = vld [vmem:[%s4426_s24 + $0x24] sm:$0xff]  }
  0x20   : > { %1713 = vperm.xlu0 %4260, %v362_v13   ;;  %v1547_v13 = vshrl.u32 %v4295_v8, 16  ;;  %v1565_v33 = vshrl.u32 %v4298_v29, 16 }
  0x21   : > { %1733 = vperm.xlu1 %4261, %v366_v34   ;;  %v1568_v34 = vshll.u32 %v4298_v29, 16 }
  0x22   : > { %3797 = vmatmul.mubr.msk.bf16.gmra.mrb[8].mxu0 %vm420_vm2, %v4266_v15  ;;  %3811 = vmatmul.mubr.msk.bf16.vlgmr.msra.gmra.mrb[8].mxu1 %vm420_vm2, %v4267_v11  ;;  %v4284_v11 = vld [vmem:[%s4426_s24 + $0x4] sm:$0xfe]   ;;  %v1066_v15 = vshrl.u32 %v4274_v54, 16 }
  0x23   : > { %3832 = vmatprep.mubr.msk.bf16.mxu0 %vm4336_vm1, %v4335_v1  ;;  %3853 = vmatpush3.bf16.msra.mxu1 %v826_v19  ;;  %v365_v19 = vld [vmem:[%s5231_s5 + $0x20] sm:$0xff]  ;;  %v1230_v20 = vrot.slane %v4284_v11, 1 }
  0x24   : > { %3814 = vmatprep.mubr.msk.bf16.mxu1 %vm4336_vm1, %v4335_v1  ;;  %3896 = vmatprep.subr.bf16.mxu1 %v4335_v1 }
  0x25   : > { %1728 = vperm.xlu0 %4260, %v365_v19   ;;  %1743 = vperm.xlu1 %4261, %v368_v45   ;;  %v4297_v19 = vld [vmem:[%s4426_s24 + $0x1c] sm:$0xff]  }
  0x2a   : > { %3833 = vmatmul.mubr.msk.bf16.vlgmr.msra.gmra.mrb[12].mxu0 %vm420_vm2, %v645_v24  ;;  %3815 = vmatmul.mubr.msk.bf16.gmra.mrb[12].mxu1 %vm420_vm2, %v4268_v12  ;;  %v4285_v12 = vld [vmem:[%s4426_s24 + $0xc] sm:$0xff]   ;;  %v3520_v24 = vld [vmem:[%s5227_s1 + $0x20] sm:$0xf] }
  0x2b   : > { %3875 = vmatpush3.bf16.msra.mxu0 %v965_v27  ;;  %3818 = vmatprep.mubr.msk.bf16.mxu1 %vm4336_vm1, %v4335_v1  ;;  %v1231_v21 = vrot.slane %v4285_v12, 1  ;;  %v1594_v28 = vsel %vm436_vm0, %v3520_v24, 0  ;;  %v1559_v24 = vshll.u32 %v4297_v19, 16 }
  0x2c   : > { %3836 = vmatprep.mubr.msk.bf16.mxu0 %vm4336_vm1, %v4335_v1  ;;  %3918 = vmatprep.subr.bf16.mxu0 %v4335_v1 }
  0x2d   : > { %v1232_v25 = vsel %vm1229_vm4, %v1230_v20, %v1231_v21  ;;  %v1234_v40 = vsel %vm1229_vm4, %v1231_v21, %v1233_v36  ;;  %v4294_v21 = vld [vmem:[%s4426_s24 + $0x4c] sm:$0xff]  }
  0x32   : > { %3837 = vmatmul.mubr.msk.bf16.gmra.mrb[16].mxu0 %vm420_vm2, %v652_v32  ;;  %3819 = vmatmul.mubr.msk.bf16.gmra.mrb[16].mxu1 %vm420_vm2, %v4269_v22  ;;  %v1068_v22 = vor.u32 %v1066_v15, %v1064_v7  ;;  %v367_v32 = vld [vmem:[%s5231_s5 + $0x30] sm:$0xff]  ;;  %v1380_v15 = vrot.slane %v4291_v10, 1 }
  0x33   : > { %3840 = vmatprep.mubr.msk.bf16.mxu0 %vm4336_vm1, %v4335_v1  ;;  %3822 = vmatprep.mubr.msk.bf16.mxu1 %vm4336_vm1, %v4335_v1 }
  0x34   : > { %v1072_v27 = vsel %vm635_vm3, %v1068_v22, %v1071_v23  ;;  %1738 = vperm.xlu0 %4260, %v367_v32   ;;  %v1381_v20 = vsel %vm1229_vm4, %v1378_v3, %v1380_v15  ;;  %v1556_v23 = vshrl.u32 %v4297_v19, 16 }
  0x38   : > { %1748 = vperm.xlu0 %4260, %v369_v35   ;;  %v1384_v35 = vrot.slane %v4296_v31, 1 }
  0x3a   : > { %3841 = vmatmul.mubr.msk.bf16.gmra.mrb[20].mxu0 %vm420_vm2, %v659_v39  ;;  %3823 = vmatmul.mubr.msk.bf16.gmra.mrb[20].mxu1 %vm420_vm2, %v4270_v30  ;;  %v1076_v30 = vshll.u32 %v4538_v59, 16 }
  0x3b   : > { %3844 = vmatprep.mubr.msk.bf16.mxu0 %vm4336_vm1, %v4335_v1  ;;  %3826 = vmatprep.mubr.msk.bf16.mxu1 %vm4336_vm1, %v4335_v1 }
  0x3c   : > { %v1078_v39 = vrot.slane %v1076_v30, 1 }
  0x3e   : > { %v1079_v42 = vsel %vm635_vm3, %v1075_v38, %v1078_v39  ;;  %v1082_v48 = vor.u32 %v1080_v43, %v1078_v39  ;;  %v1570_v38 = vrot.slane %v1568_v34, 2 }
  0x42   : > { %3845 = vmatmul.mubr.msk.bf16.gmra.mrb[24].mxu0 %vm420_vm2, %v667_v47  ;;  %3827 = vmatmul.mubr.msk.bf16.gmra.mrb[24].mxu1 %vm420_vm2, %v3425_v46  ;;  %v370_v46 = vld [vmem:[%s5231_s5 + $0x48] sm:$0x3f]  ;;  %v1235_v47 = vrot.slane %v4287_v41, 1 }
  0x43   : > { %3848 = vmatprep.mubr.msk.bf16.mxu0 %vm4336_vm1, %v4335_v1  ;;  %3854 = vmatprep.mubr.msk.bf16.mxu1 %vm4336_vm1, %v4335_v1  ;;  %v4299_v41 = vld [vmem:[%s4426_s24 + $0x2c] ss:$0 sps:$4 sm:$0x11]  }
  0x44   : > { %1753 = vperm.xlu1 %4261, %v370_v46   ;;  %v1574_v43 = vshll.u32 %v4299_v41, 16  ;;  %v4300_v46 = vld [vmem:[%s5229_s3 + $0x10] sm:$0xff]  }
  0x4a   : > { %3849 = vmatmul.mubr.msk.bf16.gmra.mrb[28].mxu0 %vm420_vm2, %v670_v51  ;;  %3855 = vmatmul.mubr.msk.bf16.vlgmr.msra.gmra.mrb[28].mxu1 %vm420_vm2, %v4273_v50  ;;  %v1236_v50 = vsel %vm1229_vm4, %v1233_v36, %v1235_v47  ;;  %v4288_v51 = vld [vmem:[%s4426_s24 + $0x24] sm:$0xff]  }
  0x4b   : > { %3876 = vmatprep.mubr.msk.bf16.mxu0 %vm4336_vm1, %v4335_v1  ;;  %3897 = vmatpush3.bf16.msra.mxu1 %v1107_v49  ;;  %v1086_v49 = vrot.slane %v1084_v44, 1  ;;  %v1576_v44 = vrot.slane %v1574_v43, 2 }
  0x4c   : > { %3858 = vmatprep.mubr.msk.bf16.mxu1 %vm4336_vm1, %v4335_v1  ;;  %3940 = vmatprep.subr.bf16.mxu1 %v4335_v1 }
  0x4d   : > { %v1087_v52 = vsel %vm635_vm3, %v1082_v48, %v1086_v49 }
  0x52   : > { %3877 = vmatmul.mubr.msk.bf16.vlgmr.msra.gmra.mrb[32].mxu0 %vm420_vm2, %v4275_v53  ;;  %3859 = vmatmul.mubr.msk.bf16.gmra.mrb[32].mxu1 %vm420_vm2, %v4274_v54  ;;  %v1088_v53 = vshrl.u32 %v3482_v37, 16  ;;  %v1237_v54 = vrot.slane %v4288_v51, 1  ;;  %v1567_v37 = vrot.slane %v1565_v33, 1 }
  0x53   : > { %3919 = vmatpush3.bf16.msra.mxu0 %v1255_v55  ;;  %3862 = vmatprep.mubr.msk.bf16.mxu1 %vm4336_vm1, %v4335_v1 }
  0x54   : > { %3880 = vmatprep.mubr.msk.bf16.mxu0 %vm4336_vm1, %v4335_v1  ;;  %3962 = vmatprep.subr.bf16.mxu0 %v4335_v1  ;;  %v1090_v55 = vor.u32 %v1088_v53, %v1086_v49 }
  0x5a   : > { %3881 = vmatmul.mubr.msk.bf16.gmra.mrb[36].mxu0 %vm420_vm2, %v4277_v56  ;;  %3863 = vmatmul.mubr.msk.bf16.gmra.mrb[36].mxu1 %vm420_vm2, %v4527_v57  ;;  %v1238_v56 = vsel %vm1229_vm4, %v1235_v47, %v1237_v54  ;;  %v4292_v57 = vld [vmem:[%s4426_s24 + $0x4] sm:$0xfe]  }
  0x5b   : > { %3884 = vmatprep.mubr.msk.bf16.mxu0 %vm4336_vm1, %v4335_v1  ;;  %3866 = vmatprep.mubr.msk.bf16.mxu1 %vm4336_vm1, %v4335_v1  ;;  %v1530_v61 = vshrl.u32 %v4292_v57, 16  ;;  %v1533_v62 = vshll.u32 %v4292_v57, 16 }
  0x5d   : > { %v1532_v4 = vrot.slane %v1530_v61, 1  ;;  %v1535_v5 = vrot.slane %v1533_v62, 2 }
  0x5f   : > { %v1536_v11 = vor.u32 %v1535_v5, %v1532_v4 }
  0x62   : > { %3885 = vmatmul.mubr.msk.bf16.gmra.mrb[40].mxu0 %vm420_vm2, %v4279_v58  ;;  %3867 = vmatmul.mubr.msk.bf16.gmra.mrb[40].mxu1 %vm420_vm2, %v4538_v59  ;;  %v4293_v58 = vld [vmem:[%s4426_s24 + $0xc] sm:$0xff]   ;;  %v4289_v59 = vld [vmem:[%s4426_s24 + $0x34] sm:$0xfe]  }
  0x63   : > { %3888 = vmatprep.mubr.msk.bf16.mxu0 %vm4336_vm1, %v4335_v1  ;;  %3870 = vmatprep.mubr.msk.bf16.mxu1 %vm4336_vm1, %v4335_v1  ;;  %v1377_v2 = vrot.slane %v4289_v59, 1 }
  0x6a   : > { %3889 = vmatmul.mubr.msk.bf16.gmra.mrb[44].mxu0 %vm420_vm2, %v4282_v63  ;;  %3871 = vmatmul.mubr.msk.bf16.gmra.mrb[44].mxu1 %vm420_vm2, %v3453_v0  ;;  %v1538_v63 = vshrl.u32 %v4293_v58, 16  ;;  %v1541_v0 = vshll.u32 %v4293_v58, 16 }
  0x6b   : > { %3892 = vmatprep.mubr.msk.bf16.mxu0 %vm4336_vm1, %v4335_v1  ;;  %3898 = vmatprep.mubr.msk.bf16.mxu1 %vm4336_vm1, %v4335_v1 }
  0x6c   : > { %v1540_v6 = vrot.slane %v1538_v63, 1  ;;  %v1543_v7 = vrot.slane %v1541_v0, 2  ;;  %v4301_v63 = vld [vmem:[%s5229_s3 + $0x18] sm:$0xff]  }
  0x6e   : > { %v1544_v12 = vor.u32 %v1543_v7, %v1540_v6 }
  0x70   : > { %v1545_v16 = vsel %vm1528_vm5, %v1536_v11, %v1544_v12 }
  0x72   : > { %3893 = vmatmul.mubr.msk.bf16.gmra.mrb[48].mxu0 %vm420_vm2, %v4283_v9  ;;  %3899 = vmatmul.mubr.msk.bf16.vlgmr.msra.gmra.mrb[48].mxu1 %vm420_vm2, %v1065_v14  ;;  %v1379_v9 = vsel %vm1229_vm4, %v1377_v2, %v1378_v3  ;;  %v1550_v14 = vshll.u32 %v4295_v8, 16 }
  0x73   : > { %3920 = vmatprep.mubr.msk.bf16.mxu0 %vm4336_vm1, %v4335_v1  ;;  %3941 = vmatpush3.bf16.msra.mxu1 %v1402_v17  ;;  %v1549_v17 = vrot.slane %v1547_v13, 1 }
  0x74   : > { %3902 = vmatprep.mubr.msk.bf16.mxu1 %vm4336_vm1, %v4335_v1  ;;  %3984 = vmatprep.subr.bf16.mxu1 %v4335_v1  ;;  %v1552_v18 = vrot.slane %v1550_v14, 2 }
  0x76   : > { %v1553_v22 = vor.u32 %v1552_v18, %v1549_v17 }
  0x78   : > { %v1554_v26 = vsel %vm1528_vm5, %v1544_v12, %v1553_v22 }
  0x7a   : > { %3921 = vmatmul.mubr.msk.bf16.vlgmr.msra.gmra.mrb[52].mxu0 %vm420_vm2, %v1232_v25  ;;  %3903 = vmatmul.mubr.msk.bf16.gmra.mrb[52].mxu1 %vm420_vm2, %v1072_v27  ;;  %v1382_v25 = vrot.slane %v4294_v21, 1  ;;  %v1558_v27 = vrot.slane %v1556_v23, 1  ;;  %v4302_v21 = vld [vmem:[%s5229_s3] sm:$0xff]  }
  0x7b   : > { %3963 = vmatpush3.bf16.msra.mxu0 %v1594_v28  ;;  %3906 = vmatprep.mubr.msk.bf16.mxu1 %vm4336_vm1, %v4335_v1  ;;  %v1561_v28 = vrot.slane %v1559_v24, 2  ;;  %v4303_v24 = vld [vmem:[%s5229_s3 + $0x8] sm:$0xff]  }
  0x7c   : > { %3924 = vmatprep.mubr.msk.bf16.mxu0 %vm4336_vm1, %v4335_v1  ;;  %4008 = vmatprep.subr.bf16.mxu0 %v4335_v1  ;;  %v1383_v30 = vsel %vm1229_vm4, %v1380_v15, %v1382_v25  ;;  %v1385_v39 = vsel %vm1229_vm4, %v1382_v25, %v1384_v35 }
  0x7d   : > { %v1562_v32 = vor.u32 %v1561_v28, %v1558_v27 }
  0x7f   : > { %v1563_v36 = vsel %vm1528_vm5, %v1553_v22, %v1562_v32 }
  0x82   : > { %3925 = vmatmul.mubr.msk.bf16.gmra.mrb[56].mxu0 %vm420_vm2, %v1234_v40  ;;  %3907 = vmatmul.mubr.msk.bf16.gmra.mrb[56].mxu1 %vm420_vm2, %v1079_v42  ;;  %v1571_v40 = vor.u32 %v1570_v38, %v1567_v37 }
  0x83   : > { %3928 = vmatprep.mubr.msk.bf16.mxu0 %vm4336_vm1, %v4335_v1  ;;  %3910 = vmatprep.mubr.msk.bf16.mxu1 %vm4336_vm1, %v4335_v1 }
  0x84   : > { %v1572_v42 = vsel %vm1528_vm5, %v1562_v32, %v1571_v40  ;;  %v1577_v45 = vsel %vm1528_vm5, %v1571_v40, %v1576_v44 }
  0x8a   : > { %3929 = vmatmul.mubr.msk.bf16.gmra.mrb[60].mxu0 %vm420_vm2, %v1236_v50  ;;  %3911 = vmatmul.mubr.msk.bf16.gmra.mrb[60].mxu1 %vm420_vm2, %v1087_v52 }
  0x8b   : > { %3932 = vmatprep.mubr.msk.bf16.mxu0 %vm4336_vm1, %v4335_v1  ;;  %3914 = vmatprep.mubr.msk.bf16.mxu1 %vm4336_vm1, %v4335_v1 }
  0x92   : > { %3933 = vmatmul.mubr.msk.bf16.gmra.mrb[64].mxu0 %vm420_vm2, %v1238_v56  ;;  %3915 = vmatmul.mubr.msk.bf16.gmra.mrb[64].mxu1 %vm420_vm2, %v1090_v55 }
  0x93   : > { %3936 = vmatprep.mubr.msk.bf16.mxu0 %vm4336_vm1, %v4335_v1  ;;  %3942 = vmatprep.mubr.msk.bf16.mxu1 %vm4336_vm1, %v4335_v1 }
  0x9a   : > { %3937 = vmatmul.mubr.msk.bf16.gmra.mrb[68].mxu0 %vm420_vm2, %v1237_v54  ;;  %3943 = vmatmul.mubr.msk.bf16.vlgmr.msra.gmra.mrb[68].mxu1 %vm420_vm2, %v1379_v9 }
  0x9b   : > { %3964 = vmatprep.mubr.msk.bf16.mxu0 %vm4336_vm1, %v4335_v1  ;;  %3946 = vmatprep.mubr.msk.bf16.mxu1 %vm4336_vm1, %v4335_v1 }
  0x9c   : > { %3985 = vmatpush3.bf16.msra.mxu1 %v4300_v46 }
  0x9d   : > { %3986 = vmatprep.subr.bf16.mxu1 %v4335_v1 }
  0xa0   : > { %3987 = vmatpush3.bf16.msra.mxu1 %v4301_v63 }
  0xa1   : > { %4032 = vmatprep.subr.bf16.mxu1 %v4335_v1 }
  0xa2   : > { %3965 = vmatmul.mubr.msk.bf16.vlgmr.msra.gmra.mrb[72].mxu0 %vm420_vm2, %v1545_v16  ;;  %3947 = vmatmul.mubr.msk.bf16.gmra.mrb[72].mxu1 %vm420_vm2, %v1381_v20 }
  0xa3   : > { %3968 = vmatprep.mubr.msk.bf16.mxu0 %vm4336_vm1, %v4335_v1  ;;  %3950 = vmatprep.mubr.msk.bf16.mxu1 %vm4336_vm1, %v4335_v1 }
  0xa4   : > { %4009 = vmatpush3.bf16.msra.mxu0 %v4302_v21 }
  0xa5   : > { %4010 = vmatprep.subr.bf16.mxu0 %v4335_v1 }
  0xa8   : > { %4011 = vmatpush3.bf16.msra.mxu0 %v4303_v24 }
  0xa9   : > { %4056 = vmatprep.subr.bf16.mxu0 %v4335_v1 }
  0xaa   : > { %3969 = vmatmul.mubr.msk.bf16.gmra.mrb[76].mxu0 %vm420_vm2, %v1554_v26  ;;  %3951 = vmatmul.mubr.msk.bf16.gmra.mrb[76].mxu1 %vm420_vm2, %v1383_v30 }
  0xab   : > { %3972 = vmatprep.mubr.msk.bf16.mxu0 %vm4336_vm1, %v4335_v1  ;;  %3954 = vmatprep.mubr.msk.bf16.mxu1 %vm4336_vm1, %v4335_v1 }
  0xb2   : > { %3973 = vmatmul.mubr.msk.bf16.gmra.mrb[80].mxu0 %vm420_vm2, %v1563_v36  ;;  %3955 = vmatmul.mubr.msk.bf16.gmra.mrb[80].mxu1 %vm420_vm2, %v1385_v39 }
  0xb3   : > { %3976 = vmatprep.mubr.msk.bf16.mxu0 %vm4336_vm1, %v4335_v1  ;;  %3958 = vmatprep.mubr.msk.bf16.mxu1 %vm4336_vm1, %v4335_v1 }
  0xba   : > { %3977 = vmatmul.mubr.msk.bf16.gmra.mrb[84].mxu0 %vm420_vm2, %v1572_v42  ;;  %3959 = vmatmul.mubr.msk.bf16.gmra.mrb[84].mxu1 %vm420_vm2, %v1384_v35 }
  0xbb   : > { %3980 = vmatprep.mubr.msk.bf16.mxu0 %vm4336_vm1, %v4335_v1  ;;  %3988 = vmatprep.mubr.msk.bf16.mxu1 %vm4336_vm1, %v4335_v1 }
  0xc2   : > { %3981 = vmatmul.mubr.msk.bf16.gmra.mrb[88].mxu0 %vm420_vm2, %v1577_v45 }
  0xc3   : > { %4012 = vmatprep.mubr.msk.bf16.mxu0 %vm4336_vm1, %v4335_v1 }
  0xe5   : > { %v474_v47 = vpop.f32.mrb[0].mxu0  ;;  %v4702_v49 = vpop.f32.mrb[0].mxu1 }
  0xe6   : > { %v3790_v48 = vpop.f32.mrb[1].mxu0  ;;  %v3802_v51 = vpop.f32.mrb[1].mxu1 }
  0xe7   : > { %v477_v50 = vpop.f32.mrb[2].mxu0  ;;  %v4704_v53 = vpop.f32.mrb[2].mxu1 }
  0xe8   : > { %v3791_v52 = vpop.f32.mrb[3].mxu0  ;;  %v3803_v54 = vpop.f32.mrb[3].mxu1 }
  0xed   : > { %v482_v55 = vpop.f32.mrb[4].mxu0  ;;  %v4706_v57 = vpop.f32.mrb[4].mxu1 }
  0xee   : > { %v3794_v56 = vpop.f32.mrb[5].mxu0  ;;  %v3806_v59 = vpop.f32.mrb[5].mxu1 }
  0xef   : > { %v485_v58 = vpop.f32.mrb[6].mxu0  ;;  %v4708_v61 = vpop.f32.mrb[6].mxu1 }
  0xf0   : > { %v3795_v60 = vpop.f32.mrb[7].mxu0  ;;  %v3807_v62 = vpop.f32.mrb[7].mxu1 }
  0xf5   : > { %v490_v0 = vpop.f32.mrb[8].mxu0  ;;  %v590_v2 = vpop.f32.mrb[8].mxu1 }
  0xf6   : > { %v3798_v3 = vpop.f32.mrb[9].mxu0  ;;  %v591_v4 = vadd.f32 %v590_v2, %v474_v47  ;;  %v3812_v5 = vpop.f32.mrb[9].mxu1 }
  0xf7   : > { %v493_v6 = vpop.f32.mrb[10].mxu0  ;;  %v593_v7 = vpop.f32.mrb[10].mxu1 }
  0xf8   : > { %v3799_v8 = vpop.f32.mrb[11].mxu0  ;;  %v594_v9 = vadd.f32 %v593_v7, %v477_v50  ;;  %v3813_v10 = vpop.f32.mrb[11].mxu1 }
  0xfd   : > { %v723_v11 = vpop.f32.mrb[12].mxu0  ;;  %v598_v12 = vpop.f32.mrb[12].mxu1 }
  0xfe   : > { %v762_v13 = vadd.f32 %v723_v11, %v591_v4  ;;  %v3834_v14 = vpop.f32.mrb[13].mxu0  ;;  %v599_v15 = vadd.f32 %v598_v12, %v482_v55  ;;  %v3816_v16 = vpop.f32.mrb[13].mxu1 }
  0xff   : > { %v726_v17 = vpop.f32.mrb[14].mxu0  ;;  %v601_v18 = vpop.f32.mrb[14].mxu1 }
 0x100   : > { %v763_v19 = vadd.f32 %v726_v17, %v594_v9  ;;  %v3835_v20 = vpop.f32.mrb[15].mxu0  ;;  %v602_v22 = vadd.f32 %v601_v18, %v485_v58  ;;  %v3817_v23 = vpop.f32.mrb[15].mxu1 }
 0x105   : > { %v731_v25 = vpop.f32.mrb[16].mxu0  ;;  %v606_v26 = vpop.f32.mrb[16].mxu1 }
 0x106   : > { %v764_v27 = vadd.f32 %v731_v25, %v599_v15  ;;  %v3838_v28 = vpop.f32.mrb[17].mxu0  ;;  %v607_v29 = vadd.f32 %v606_v26, %v490_v0  ;;  %v3820_v30 = vpop.f32.mrb[17].mxu1 }
 0x107   : > { %v734_v31 = vpop.f32.mrb[18].mxu0  ;;  %v609_v32 = vpop.f32.mrb[18].mxu1 }
 0x108   : > { %v765_v33 = vadd.f32 %v734_v31, %v602_v22  ;;  %v3839_v34 = vpop.f32.mrb[19].mxu0  ;;  %v610_v35 = vadd.f32 %v609_v32, %v493_v6  ;;  %v3821_v36 = vpop.f32.mrb[19].mxu1 }
 0x10d   : > { %v739_v37 = vpop.f32.mrb[20].mxu0  ;;  %v614_v38 = vpop.f32.mrb[20].mxu1 }
 0x10e   : > { %v766_v39 = vadd.f32 %v739_v37, %v607_v29  ;;  %v3842_v40 = vpop.f32.mrb[21].mxu0  ;;  %v615_v41 = vadd.f32 %v614_v38, %v4702_v49  ;;  %v3824_v42 = vpop.f32.mrb[21].mxu1 }
 0x10f   : > { %v742_v43 = vpop.f32.mrb[22].mxu0  ;;  %v617_v44 = vpop.f32.mrb[22].mxu1 }
 0x110   : > { %v767_v45 = vadd.f32 %v742_v43, %v610_v35  ;;  %v3843_v46 = vpop.f32.mrb[23].mxu0  ;;  %v618_v47 = vadd.f32 %v617_v44, %v4704_v53  ;;  %v3825_v48 = vpop.f32.mrb[23].mxu1 }
 0x115   : > { %v747_v50 = vpop.f32.mrb[24].mxu0  ;;  %v622_v51 = vpop.f32.mrb[24].mxu1 }
 0x116   : > { %v768_v52 = vadd.f32 %v747_v50, %v615_v41  ;;  %v3846_v54 = vpop.f32.mrb[25].mxu0  ;;  %v623_v55 = vadd.f32 %v622_v51, %v4706_v57  ;;  %v3828_v56 = vpop.f32.mrb[25].mxu1 }
 0x117   : > { %v750_v58 = vpop.f32.mrb[26].mxu0  ;;  %v625_v59 = vpop.f32.mrb[26].mxu1 }
 0x118   : > { %v769_v60 = vadd.f32 %v750_v58, %v618_v47  ;;  %v3847_v62 = vpop.f32.mrb[27].mxu0  ;;  %v626_v49 = vadd.f32 %v625_v59, %v4708_v61  ;;  %v3829_v63 = vpop.f32.mrb[27].mxu1 }
 0x11d   : > { %v755_v0 = vpop.f32.mrb[28].mxu0  ;;  %v862_v3 = vpop.f32.mrb[28].mxu1 }
 0x11e   : > { %v770_v2 = vadd.f32 %v755_v0, %v623_v55  ;;  %v3850_v4 = vpop.f32.mrb[29].mxu0  ;;  %v901_v53 = vadd.f32 %v862_v3, %v762_v13  ;;  %v3856_v5 = vpop.f32.mrb[29].mxu1 }
 0x11f   : > { %v758_v6 = vpop.f32.mrb[30].mxu0  ;;  %v865_v8 = vpop.f32.mrb[30].mxu1 }
 0x120   : > { %v771_v7 = vadd.f32 %v758_v6, %v626_v49  ;;  %v3851_v9 = vpop.f32.mrb[31].mxu0  ;;  %v902_v10 = vadd.f32 %v865_v8, %v763_v19  ;;  %v3857_v57 = vpop.f32.mrb[31].mxu1 }
 0x125   : > { %v1001_v11 = vpop.f32.mrb[32].mxu0  ;;  %v870_v12 = vpop.f32.mrb[32].mxu1 }
 0x126   : > { %v1040_v14 = vadd.f32 %v1001_v11, %v901_v53  ;;  %v3878_v15 = vpop.f32.mrb[33].mxu0  ;;  %v903_v16 = vadd.f32 %v870_v12, %v764_v27  ;;  %v3860_v17 = vpop.f32.mrb[33].mxu1 }
 0x127   : > { %v1004_v61 = vpop.f32.mrb[34].mxu0  ;;  %v873_v18 = vpop.f32.mrb[34].mxu1 }
 0x128   : > { %v1041_v20 = vadd.f32 %v1004_v61, %v902_v10  ;;  %v3879_v21 = vpop.f32.mrb[35].mxu0  ;;  %v904_v22 = vadd.f32 %v873_v18, %v765_v33  ;;  %v3861_v23 = vpop.f32.mrb[35].mxu1 }
 0x12d   : > { %v1009_v13 = vpop.f32.mrb[36].mxu0  ;;  %v878_v24 = vpop.f32.mrb[36].mxu1 }
 0x12e   : > { %v1042_v25 = vadd.f32 %v1009_v13, %v903_v16  ;;  %v3882_v26 = vpop.f32.mrb[37].mxu0  ;;  %v905_v28 = vadd.f32 %v878_v24, %v766_v39  ;;  %v3864_v29 = vpop.f32.mrb[37].mxu1 }
 0x12f   : > { %v1012_v19 = vpop.f32.mrb[38].mxu0  ;;  %v881_v30 = vpop.f32.mrb[38].mxu1 }
 0x130   : > { %v1043_v31 = vadd.f32 %v1012_v19, %v904_v22  ;;  %v3883_v32 = vpop.f32.mrb[39].mxu0  ;;  %v906_v34 = vadd.f32 %v881_v30, %v767_v45  ;;  %v3865_v35 = vpop.f32.mrb[39].mxu1 }
 0x135   : > { %v1017_v27 = vpop.f32.mrb[40].mxu0  ;;  %v886_v36 = vpop.f32.mrb[40].mxu1 }
 0x136   : > { %v1044_v37 = vadd.f32 %v1017_v27, %v905_v28  ;;  %v3886_v38 = vpop.f32.mrb[41].mxu0  ;;  %v907_v40 = vadd.f32 %v886_v36, %v768_v52  ;;  %v3868_v41 = vpop.f32.mrb[41].mxu1 }
 0x137   : > { %v1020_v33 = vpop.f32.mrb[42].mxu0  ;;  %v889_v42 = vpop.f32.mrb[42].mxu1 }
 0x138   : > { %v1045_v43 = vadd.f32 %v1020_v33, %v906_v34  ;;  %v3887_v44 = vpop.f32.mrb[43].mxu0  ;;  %v908_v46 = vadd.f32 %v889_v42, %v769_v60  ;;  %v3869_v47 = vpop.f32.mrb[43].mxu1 }
 0x13d   : > { %v1025_v39 = vpop.f32.mrb[44].mxu0  ;;  %v894_v48 = vpop.f32.mrb[44].mxu1 }
 0x13e   : > { %v1046_v50 = vadd.f32 %v1025_v39, %v907_v40  ;;  %v3890_v51 = vpop.f32.mrb[45].mxu0  ;;  %v909_v54 = vadd.f32 %v894_v48, %v770_v2  ;;  %v3872_v55 = vpop.f32.mrb[45].mxu1 }
 0x13f   : > { %v1028_v45 = vpop.f32.mrb[46].mxu0  ;;  %v897_v56 = vpop.f32.mrb[46].mxu1 }
 0x140   : > { %v1047_v58 = vadd.f32 %v1028_v45, %v908_v46  ;;  %v3891_v59 = vpop.f32.mrb[47].mxu0  ;;  %v910_v62 = vadd.f32 %v897_v56, %v771_v7  ;;  %v3873_v49 = vpop.f32.mrb[47].mxu1 }
 0x145   : > { %v1033_v52 = vpop.f32.mrb[48].mxu0  ;;  %v1143_v0 = vpop.f32.mrb[48].mxu1 }
 0x146   : > { %v1048_v63 = vadd.f32 %v1033_v52, %v909_v54  ;;  %v3894_v3 = vpop.f32.mrb[49].mxu0  ;;  %v1182_v4 = vadd.f32 %v1143_v0, %v1040_v14  ;;  %v3900_v53 = vpop.f32.mrb[49].mxu1 }
 0x147   : > { %v1036_v60 = vpop.f32.mrb[50].mxu0  ;;  %v1146_v6 = vpop.f32.mrb[50].mxu1 }
 0x148   : > { %v1049_v5 = vadd.f32 %v1036_v60, %v910_v62  ;;  %v3895_v8 = vpop.f32.mrb[51].mxu0  ;;  %v1183_v9 = vadd.f32 %v1146_v6, %v1041_v20  ;;  %v3901_v10 = vpop.f32.mrb[51].mxu1 }
 0x14d   : > { %v1291_v2 = vpop.f32.mrb[52].mxu0  ;;  %v1151_v57 = vpop.f32.mrb[52].mxu1 }
 0x14e   : > { %v1330_v11 = vadd.f32 %v1291_v2, %v1182_v4  ;;  %v3922_v12 = vpop.f32.mrb[53].mxu0  ;;  %v1184_v15 = vadd.f32 %v1151_v57, %v1042_v25  ;;  %v3904_v16 = vpop.f32.mrb[53].mxu1 }
 0x14f   : > { %v1294_v7 = vpop.f32.mrb[54].mxu0  ;;  %v1154_v17 = vpop.f32.mrb[54].mxu1 }
 0x150   : > { %v1331_v61 = vadd.f32 %v1294_v7, %v1183_v9  ;;  %v3923_v18 = vpop.f32.mrb[55].mxu0  ;;  %v1185_v21 = vadd.f32 %v1154_v17, %v1043_v31  ;;  %v3905_v22 = vpop.f32.mrb[55].mxu1 }
 0x151   : > { %v4742_v9 = vpop.permute.xlu0 %1708 }
 0x155   : > { %v1299_v14 = vpop.f32.mrb[56].mxu0  ;;  %v1159_v23 = vpop.f32.mrb[56].mxu1 }
 0x156   : > { %v1332_v13 = vadd.f32 %v1299_v14, %v1184_v15  ;;  %v3926_v24 = vpop.f32.mrb[57].mxu0  ;;  %v1186_v26 = vadd.f32 %v1159_v23, %v1044_v37  ;;  %v3908_v28 = vpop.f32.mrb[57].mxu1 }
 0x157   : > { %v1302_v20 = vpop.f32.mrb[58].mxu0  ;;  %v1162_v29 = vpop.f32.mrb[58].mxu1 }
 0x158   : > { %v1333_v19 = vadd.f32 %v1302_v20, %v1185_v21  ;;  %v3927_v30 = vpop.f32.mrb[59].mxu0  ;;  %v1187_v32 = vadd.f32 %v1162_v29, %v1045_v43  ;;  %v3909_v34 = vpop.f32.mrb[59].mxu1 }
 0x159   : > { %v4751_v24 = vpop.permute.xlu0 %1713  ;;  %v4754_v20 = vpop.permute.xlu1 %1718 }
 0x15d   : > { %v1307_v25 = vpop.f32.mrb[60].mxu0  ;;  %v1167_v35 = vpop.f32.mrb[60].mxu1 }
 0x15e   : > { %v1334_v27 = vadd.f32 %v1307_v25, %v1186_v26  ;;  %v3930_v36 = vpop.f32.mrb[61].mxu0  ;;  %v1188_v38 = vadd.f32 %v1167_v35, %v1046_v50  ;;  %v3912_v40 = vpop.f32.mrb[61].mxu1 }
 0x15f   : > { %v1310_v31 = vpop.f32.mrb[62].mxu0  ;;  %v1170_v41 = vpop.f32.mrb[62].mxu1 }
 0x160   : > { %v4732_v33 = vadd.f32 %v1310_v31, %v1187_v32  ;;  %v3931_v42 = vpop.f32.mrb[63].mxu0  ;;  %v1189_v44 = vadd.f32 %v1170_v41, %v1047_v58  ;;  %v3913_v37 = vpop.f32.mrb[63].mxu1 }
 0x165   : > { %v1315_v46 = vpop.f32.mrb[64].mxu0  ;;  %v1175_v47 = vpop.f32.mrb[64].mxu1 }
 0x166   : > { %v4734_v39 = vadd.f32 %v1315_v46, %v1188_v38  ;;  %v3934_v48 = vpop.f32.mrb[65].mxu0  ;;  %v1190_v43 = vadd.f32 %v1175_v47, %v1048_v63  ;;  %v3916_v51 = vpop.f32.mrb[65].mxu1  ;;  %v1802_v46 = vld [vmem:[#allocation2 + $0x1] sm:$0xff] }
 0x167   : > { %v1318_v54 = vpop.f32.mrb[66].mxu0  ;;  %v1178_v55 = vpop.f32.mrb[66].mxu1  ;;  %v1783_v47 = vld [vmem:[#allocation2] sm:$0xff] }
 0x168   : > { %v4736_v45 = vadd.f32 %v1318_v54, %v1189_v44  ;;  %v3935_v50 = vpop.f32.mrb[67].mxu0  ;;  %v1191_v56 = vadd.f32 %v1178_v55, %v1049_v5  ;;  %v3917_v59 = vpop.f32.mrb[67].mxu1  ;;  %v4747_v5 = vld [vmem:[%s5228_s2] ss:$0 sm:$0xff] }
 0x169   : > { %v4304_v50 = vld [vmem:[%s5229_s3 + $0x20] sm:$0xff]  }
 0x16d   : > { %v1323_v62 = vpop.f32.mrb[68].mxu0  ;;  %v1438_v52 = vpop.f32.mrb[68].mxu1 }
 0x16e   : > { %v4738_v49 = vadd.f32 %v1323_v62, %v1190_v43  ;;  %v3938_v58 = vpop.f32.mrb[69].mxu0  ;;  %v1477_v0 = vadd.f32 %v1438_v52, %v1330_v11  ;;  %v3944_v3 = vpop.f32.mrb[69].mxu1 }
 0x16f   : > { %v1326_v4 = vpop.f32.mrb[70].mxu0  ;;  %v1441_v60 = vpop.f32.mrb[70].mxu1 }
 0x170   : > { %v4740_v53 = vadd.f32 %v1326_v4, %v1191_v56  ;;  %v3939_v63 = vpop.f32.mrb[71].mxu0  ;;  %v1478_v6 = vadd.f32 %v1441_v60, %v1331_v61  ;;  %v3945_v8 = vpop.f32.mrb[71].mxu1  ;;  %v4306_v60 = vld [vmem:[%s5229_s3 + $0x30] sm:$0xff]  }
 0x171   : > { %v4763_v43 = vpop.permute.xlu1 %1723 }
 0x175   : > { %v1630_v10 = vpop.f32.mrb[72].mxu0  ;;  %v1446_v2 = vpop.f32.mrb[72].mxu1 }
 0x176   : > { %v1669_v57 = vadd.f32 %v1630_v10, %v1477_v0  ;;  %v3966_v12 = vpop.f32.mrb[73].mxu0  ;;  %v1479_v11 = vadd.f32 %v1446_v2, %v1332_v13  ;;  %v3948_v15 = vpop.f32.mrb[73].mxu1 }
 0x177   : > { %v1633_v16 = vpop.f32.mrb[74].mxu0  ;;  %v1449_v17 = vpop.f32.mrb[74].mxu1 }
 0x178   : > { %v1686_v7 = vadd.f32 %v4747_v5, %v1669_v57  ;;  %v1670_v18 = vadd.f32 %v1633_v16, %v1478_v6  ;;  %v3967_v61 = vpop.f32.mrb[75].mxu0  ;;  %v1480_v21 = vadd.f32 %v1449_v17, %v1333_v19  ;;  %v3949_v22 = vpop.f32.mrb[75].mxu1  ;;  %v4305_v57 = vld [vmem:[%s5229_s3 + $0x28] sm:$0xff]  }
 0x179   : > { %v4788_v15 = vpop.permute.xlu0 %1728 }
 0x17a   : > { %v1696_v14 = vmax.f32 %v1686_v7, 0.0  ;;  %v1687_v23 = vadd.f32 %v4747_v5, %v1670_v18  ;;  %v4795_v18 = vpop.permute.xlu1 %1733 }
 0x17c   : > { %v1756_v26 = vmul.f32 %v4742_v9, %v1696_v14  ;;  %v1697_v28 = vmax.f32 %v1687_v23, 0.0 }
 0x17d   : > { %v1638_v13 = vpop.f32.mrb[76].mxu0  ;;  %v1454_v30 = vpop.f32.mrb[76].mxu1 }
 0x17e   : > { %1770 = vst.msk [vmem:[#allocation2 + $0xb] sm:$0xff] %vm1766_vm6, %v1756_v26  ;;  %v1757_v29 = vmul.f32 %v4751_v24, %v1697_v28  ;;  %v1671_v32 = vadd.f32 %v1638_v13, %v1479_v11  ;;  %v3970_v34 = vpop.f32.mrb[77].mxu0  ;;  %v1481_v19 = vadd.f32 %v1454_v30, %v1334_v27  ;;  %v3952_v25 = vpop.f32.mrb[77].mxu1 }
 0x17f   : > { %v1641_v35 = vpop.f32.mrb[78].mxu0  ;;  %v1457_v38 = vpop.f32.mrb[78].mxu1 }
 0x180   : > { %1771 = vst.msk [vmem:[#allocation2 + $0x13] sm:$0xff] %vm1766_vm6, %v1757_v29  ;;  %v1688_v36 = vadd.f32 %v4747_v5, %v1671_v32  ;;  %v1672_v40 = vadd.f32 %v1641_v35, %v1480_v21  ;;  %v3971_v31 = vpop.f32.mrb[79].mxu0  ;;  %v1482_v41 = vadd.f32 %v1457_v38, %v4732_v33  ;;  %v3953_v42 = vpop.f32.mrb[79].mxu1 }
 0x181   : > { %v4812_v42 = vpop.permute.xlu0 %1738 }
 0x182   : > { %v1698_v44 = vmax.f32 %v1688_v36, 0.0  ;;  %v1689_v37 = vadd.f32 %v4747_v5, %v1672_v40 }
 0x184   : > { %v1758_v48 = vmul.f32 %v4754_v20, %v1698_v44  ;;  %v1699_v27 = vmax.f32 %v1689_v37, 0.0 }
 0x185   : > { %v1646_v51 = vpop.f32.mrb[80].mxu0  ;;  %v1803_v54 = vld [vmem:[#allocation2 + $0x9] sm:$0xff]  ;;  %v1462_v56 = vpop.f32.mrb[80].mxu1 }
 0x186   : > { %v1784_v55 = vld [vmem:[#allocation2 + $0x8] sm:$0xff]  ;;  %1772 = vst.msk [vmem:[#allocation2 + $0x1b] sm:$0xff] %vm1766_vm6, %v1758_v48  ;;  %v1759_v33 = vmul.f32 %v4763_v43, %v1699_v27  ;;  %v1673_v59 = vadd.f32 %v1646_v51, %v1481_v19  ;;  %v3974_v62 = vpop.f32.mrb[81].mxu0  ;;  %v1812_v52 = vpack.c.bf16 %v1803_v54, %v1802_v46  ;;  %v1483_v0 = vadd.f32 %v1462_v56, %v4734_v39  ;;  %v3956_v3 = vpop.f32.mrb[81].mxu1 }
 0x187   : > { %v1793_v58 = vpack.c.bf16 %v1784_v55, %v1783_v47  ;;  %v1649_v4 = vpop.f32.mrb[82].mxu0  ;;  %v1465_v6 = vpop.f32.mrb[82].mxu1  ;;  %v1804_v17 = vld [vmem:[#allocation2 + $0x11] sm:$0xff] }
 0x188   : > { %1773 = vst.msk [vmem:[#allocation2 + $0x23] sm:$0xff] %vm1766_vm6, %v1759_v33  ;;  %v1690_v63 = vadd.f32 %v4747_v5, %v1673_v59  ;;  %v1674_v8 = vadd.f32 %v1649_v4, %v1482_v41  ;;  %v3975_v10 = vpop.f32.mrb[83].mxu0  ;;  %3989 = vmatmul.mubr.msk.bf16.vlgmr.msra.gmra.mrb[88].mxu1 %vm1766_vm6, %v1812_v52  ;;  %v1484_v2 = vadd.f32 %v1465_v6, %v4736_v45  ;;  %v3957_v39 = vpop.f32.mrb[83].mxu1  ;;  %v4307_v45 = vld [vmem:[%s5229_s3 + $0x38] sm:$0xff]   ;;  %v1785_v22 = vld [vmem:[#allocation2 + $0x10] sm:$0xff] }
 0x189   : > { %4013 = vmatmul.mubr.msk.bf16.vlgmr.msra.gmra.mrb[92].mxu0 %vm1766_vm6, %v1793_v58  ;;  %4033 = vmatpush3.bf16.msra.mxu1 %v4304_v50  ;;  %v4815_v47 = vpop.permute.xlu1 %1743  ;;  %v4828_v4 = vpop.permute.xlu0 %1748 }
 0x18a   : > { %3992 = vmatprep.mubr.msk.bf16.mxu1 %vm4336_vm1, %v4335_v1  ;;  %v1700_v12 = vmax.f32 %v1690_v63, 0.0  ;;  %v1691_v11 = vadd.f32 %v4747_v5, %v1674_v8  ;;  %4016 = vmatprep.mubr.msk.bf16.mxu0 %vm4336_vm1, %v4335_v1 }
 0x18b   : > { %4034 = vmatprep.subr.bf16.mxu1 %v4335_v1  ;;  %4057 = vmatpush3.bf16.msra.mxu0 %v4306_v60 }
 0x18c   : > { %v1760_v16 = vmul.f32 %v4788_v15, %v1700_v12  ;;  %v1701_v7 = vmax.f32 %v1691_v11, 0.0  ;;  %4058 = vmatprep.subr.bf16.mxu0 %v4335_v1 }
 0x18d   : > { %v1654_v61 = vpop.f32.mrb[84].mxu0  ;;  %v1805_v21 = vld [vmem:[#allocation2 + $0x19] sm:$0xff]  ;;  %4035 = vmatpush3.bf16.msra.mxu1 %v4305_v57  ;;  %v1470_v26 = vpop.f32.mrb[84].mxu1 }
 0x18e   : > { %v1786_v14 = vld [vmem:[#allocation2 + $0x18] sm:$0xff]  ;;  %1774 = vst.msk [vmem:[#allocation2 + $0x2b] sm:$0xff] %vm1766_vm6, %v1760_v16  ;;  %v1761_v23 = vmul.f32 %v4795_v18, %v1701_v7  ;;  %v1675_v28 = vadd.f32 %v1654_v61, %v1483_v0  ;;  %v3978_v13 = vpop.f32.mrb[85].mxu0  ;;  %v1813_v29 = vpack.c.bf16 %v1805_v21, %v1804_v17  ;;  %4080 = vmatprep.subr.bf16.mxu1 %v4335_v1  ;;  %v3960_v34 = vpop.f32.mrb[85].mxu1  ;;  %v2022_v21 = vld [vmem:[#allocation2 + $0x2] sm:$0xff] }
 0x18f   : > { %v1794_v30 = vpack.c.bf16 %v1786_v14, %v1785_v22  ;;  %v1485_v32 = vadd.f32 %v1470_v26, %v4738_v49  ;;  %v1657_v19 = vpop.f32.mrb[86].mxu0  ;;  %4059 = vmatpush3.bf16.msra.mxu0 %v4307_v45  ;;  %v1473_v35 = vpop.f32.mrb[86].mxu1  ;;  %v1806_v46 = vld [vmem:[#allocation2 + $0x21] sm:$0xff]  ;;  %v2023_v22 = vld [vmem:[#allocation2 + $0xa] sm:$0xff]  ;;  %v2153_v14 = vld [vmem:[#allocation2 + $0x12] sm:$0xff] }
 0x190   : > { %1775 = vst.msk [vmem:[#allocation2 + $0x33] sm:$0xff] %vm1766_vm6, %v1761_v23  ;;  %v1692_v25 = vadd.f32 %v4747_v5, %v1675_v28  ;;  %v1676_v36 = vadd.f32 %v1657_v19, %v1484_v2  ;;  %v3979_v38 = vpop.f32.mrb[87].mxu0  ;;  %3993 = vmatmul.mubr.msk.bf16.gmra.mrb[92].mxu1 %vm1766_vm6, %v1813_v29  ;;  %v1486_v40 = vadd.f32 %v1473_v35, %v4740_v53  ;;  %v3961_v31 = vpop.f32.mrb[87].mxu1  ;;  %v1787_v27 = vld [vmem:[#allocation2 + $0x20] sm:$0xff]  ;;  %v4310_v13 = vld [vmem:[%s5229_s3 + $0x50] sm:$0xff]   ;;  %v4309_v29 = vld [vmem:[%s5229_s3 + $0x48] sm:$0xff]  }
 0x191   : > { %4017 = vmatmul.mubr.msk.bf16.gmra.mrb[96].mxu0 %vm1766_vm6, %v1794_v30  ;;  %3996 = vmatprep.mubr.msk.bf16.mxu1 %vm4336_vm1, %v4335_v1  ;;  %v4831_v8 = vpop.permute.xlu1 %1753  ;;  %v4308_v23 = vld [vmem:[%s5229_s3 + $0x40] sm:$0xff]   ;;  %v2032_v26 = vpack.c.bf16 %v2023_v22, %v2022_v21  ;;  %v2162_v28 = vpack.c.bf16 %v2153_v14, %v2023_v22  ;;  %v4311_v34 = vld [vmem:[%s5229_s3 + $0x58] sm:$0xff]  }
 0x192   : > { %4020 = vmatprep.mubr.msk.bf16.mxu0 %vm4336_vm1, %v4335_v1  ;;  %v1702_v49 = vmax.f32 %v1692_v25, 0.0  ;;  %v1693_v41 = vadd.f32 %v4747_v5, %v1676_v36  ;;  %4104 = vmatprep.subr.bf16.mxu0 %v4335_v1  ;;  %v2025_v30 = vld [vmem:[#allocation2 + $0x1a] sm:$0xff] }
 0x193   : > { %v2033_v19 = vpack.c.bf16 %v2025_v30, %v2153_v14 }
 0x194   : > { %v1762_v44 = vmul.f32 %v4812_v42, %v1702_v49  ;;  %v1703_v37 = vmax.f32 %v1693_v41, 0.0 }
 0x195   : > { %v1662_v53 = vpop.f32.mrb[88].mxu0  ;;  %v1807_v48 = vld [vmem:[#allocation2 + $0x29] sm:$0xff] }
 0x196   : > { %v1788_v51 = vld [vmem:[#allocation2 + $0x28] sm:$0xff]  ;;  %1776 = vst.msk [vmem:[#allocation2 + $0x3b] sm:$0xff] %vm1766_vm6, %v1762_v44  ;;  %v1763_v54 = vmul.f32 %v4815_v47, %v1703_v37  ;;  %v1677_v55 = vadd.f32 %v1662_v53, %v1485_v32  ;;  %v3982_v50 = vpop.f32.mrb[89].mxu0  ;;  %v1814_v33 = vpack.c.bf16 %v1807_v48, %v1806_v46 }
 0x197   : > { %v1795_v56 = vpack.c.bf16 %v1788_v51, %v1787_v27  ;;  %v1665_v59 = vpop.f32.mrb[90].mxu0  ;;  %v1808_v6 = vld [vmem:[#allocation2 + $0x31] sm:$0xff]  ;;  %v2155_v32 = vld [vmem:[#allocation2 + $0x22] sm:$0xff] }
 0x198   : > { %1777 = vst.msk [vmem:[#allocation2 + $0x43] sm:$0xff] %vm1766_vm6, %v1763_v54  ;;  %v1694_v62 = vadd.f32 %v4747_v5, %v1677_v55  ;;  %v1678_v52 = vadd.f32 %v1665_v59, %v1486_v40  ;;  %v3983_v58 = vpop.f32.mrb[91].mxu0  ;;  %3997 = vmatmul.mubr.msk.bf16.gmra.mrb[96].mxu1 %vm1766_vm6, %v1814_v33  ;;  %v1789_v2 = vld [vmem:[#allocation2 + $0x30] sm:$0xff]  ;;  %v2163_v25 = vpack.c.bf16 %v2155_v32, %v2025_v30  ;;  %v4312_v33 = vld [vmem:[%s5229_s3 + $0x60] sm:$0xff]  }
 0x199   : > { %4021 = vmatmul.mubr.msk.bf16.gmra.mrb[100].mxu0 %vm1766_vm6, %v1795_v56  ;;  %4000 = vmatprep.mubr.msk.bf16.mxu1 %vm4336_vm1, %v4335_v1  ;;  %v2027_v35 = vld [vmem:[#allocation2 + $0x2a] sm:$0xff]  ;;  %v2157_v36 = vld [vmem:[#allocation2 + $0x32] sm:$0xff] }
 0x19a   : > { %4024 = vmatprep.mubr.msk.bf16.mxu0 %vm4336_vm1, %v4335_v1  ;;  %v1704_v0 = vmax.f32 %v1694_v62, 0.0  ;;  %v1695_v3 = vadd.f32 %v4747_v5, %v1678_v52  ;;  %v2034_v38 = vpack.c.bf16 %v2027_v35, %v2155_v32  ;;  %v2164_v40 = vpack.c.bf16 %v2157_v36, %v2027_v35  ;;  %v2283_v51 = vld [vmem:[#allocation2 + $0x13] sm:$0xff]  ;;  %v2282_v55 = vld [vmem:[#allocation2 + $0xb] sm:$0xff]  ;;  %v2285_v58 = vld [vmem:[#allocation2 + $0x23] sm:$0xff] }
 0x19b   : > { %v4894_v54 = vld [vmem:[#allocation2 + $0x14] sm:$0xff]  ;;  %v2412_v50 = vld [vmem:[#allocation2 + $0xc] sm:$0xff]  ;;  %v2292_v56 = vpack.c.bf16 %v2283_v51, %v2282_v55  ;;  %v4316_v32 = vld [vmem:[%s5229_s3 + $0x80] sm:$0xff]  }
 0x19c   : > { %v1764_v60 = vmul.f32 %v4828_v4, %v1704_v0  ;;  %v1705_v63 = vmax.f32 %v1695_v3, 0.0  ;;  %v2422_v59 = vpack.c.bf16 %v4894_v54, %v2412_v50  ;;  %v4314_v62 = vld [vmem:[%s5229_s3 + $0x70] sm:$0xff]   ;;  %v4313_v52 = vld [vmem:[%s5229_s3 + $0x68] sm:$0xff]   ;;  %v4315_v3 = vld [vmem:[%s5229_s3 + $0x78] sm:$0xff]  }
 0x19d   : > { %v1809_v10 = vld [vmem:[#allocation2 + $0x39] sm:$0xff]  ;;  %v4913_v0 = vld [vmem:[#allocation2 + $0x24] sm:$0xff] }
 0x19e   : > { %v1790_v39 = vld [vmem:[#allocation2 + $0x38] sm:$0xff]  ;;  %1778 = vst.msk [vmem:[#allocation2 + $0x4b] sm:$0xff] %vm1766_vm6, %v1764_v60  ;;  %v1765_v57 = vmul.f32 %v4831_v8, %v1705_v63  ;;  %v1815_v12 = vpack.c.bf16 %v1809_v10, %v1808_v6 }
 0x19f   : > { %v1796_v11 = vpack.c.bf16 %v1790_v39, %v1789_v2  ;;  %v1810_v5 = vld [vmem:[#allocation2 + $0x41] sm:$0xff]  ;;  %v2287_v2 = vld [vmem:[#allocation2 + $0x33] sm:$0xff] }
 0x1a0   : > { %1780 = vst.msk [vmem:[#allocation2 + $0x53] sm:$0x3f] %vm1779_vm8, %v1765_v57  ;;  %4001 = vmatmul.mubr.msk.bf16.gmra.mrb[100].mxu1 %vm1766_vm6, %v1815_v12  ;;  %v1791_v16 = vld [vmem:[#allocation2 + $0x40] sm:$0xff]  ;;  %v2417_v39 = vld [vmem:[#allocation2 + $0x34] sm:$0xff]  ;;  %v2286_v57 = vld [vmem:[#allocation2 + $0x2b] sm:$0xff] }
 0x1a1   : > { %4025 = vmatmul.mubr.msk.bf16.gmra.mrb[104].mxu0 %vm1766_vm6, %v1796_v11  ;;  %4004 = vmatprep.mubr.msk.bf16.mxu1 %vm4336_vm1, %v4335_v1  ;;  %v2029_v31 = vld [vmem:[#allocation2 + $0x3a] sm:$0xff]  ;;  %v2159_v49 = vld [vmem:[#allocation2 + $0x42] sm:$0xff]  ;;  %v2416_v12 = vld [vmem:[#allocation2 + $0x2c] sm:$0xff]  ;;  %v2294_v11 = vpack.c.bf16 %v2287_v2, %v2286_v57 }
 0x1a2   : > { %4028 = vmatprep.mubr.msk.bf16.mxu0 %vm4336_vm1, %v4335_v1  ;;  %v2035_v41 = vpack.c.bf16 %v2029_v31, %v2157_v36  ;;  %v2165_v44 = vpack.c.bf16 %v2159_v49, %v2029_v31  ;;  %v2284_v60 = vld [vmem:[#allocation2 + $0x1b] sm:$0xff]  ;;  %v4317_v36 = vld [vmem:[%s5229_s3 + $0x88] sm:$0xff]   ;;  %v2553_v31 = vpack.c.bf16 %v2416_v12, %v4913_v0 }
 0x1a3   : > { %v2414_v63 = vld [vmem:[#allocation2 + $0x1c] sm:$0xff]  ;;  %v2293_v6 = vpack.c.bf16 %v2285_v58, %v2284_v60 }
 0x1a4   : > { %v2423_v10 = vpack.c.bf16 %v4913_v0, %v2414_v63  ;;  %v2672_v30 = vld [vmem:[#allocation2 + $0x15] sm:$0xff]  ;;  %v4320_v2 = vld [vmem:[%s4426_s24 + $0xa0] sm:$0xff]  }
 0x1a5   : > { %v1811_v45 = vld [vmem:[#allocation2 + $0x49] sm:$0x3f]  ;;  %v2802_v58 = vld [vmem:[#allocation2 + $0x16] sm:$0xff] }
 0x1a6   : > { %v1792_v7 = vld [vmem:[#allocation2 + $0x48] sm:$0x3f]  ;;  %v1816_v17 = vpack.c.bf16 %v1811_v45, %v1810_v5  ;;  %v2424_v5 = vpack.c.bf16 %v2417_v39, %v2416_v12  ;;  %v4319_v60 = vld [vmem:[%s4426_s24 + $0x98] sm:$0xff]  }
 0x1a7   : > { %v1797_v61 = vpack.c.bf16 %v1792_v7, %v1791_v16  ;;  %v2031_v37 = vld [vmem:[#allocation2 + $0x4a] sm:$0x3f]  ;;  %v2161_v46 = vld [vmem:[#allocation2 + $0x52] sm:$0x3f]  ;;  %v2288_v7 = vld [vmem:[#allocation2 + $0x3b] sm:$0xff] }
 0x1a8   : > { %4005 = vmatmul.mubr.msk.bf16.gmra.mrb[104].mxu1 %vm1766_vm6, %v1816_v17  ;;  %v2160_v53 = vld [vmem:[#allocation2 + $0x4a] sm:$0xff]  ;;  %v2036_v48 = vpack.c.bf16 %v2031_v37, %v2159_v49  ;;  %v2418_v17 = vld [vmem:[#allocation2 + $0x3c] sm:$0xff]  ;;  %v2291_v22 = vld [vmem:[#allocation2 + $0x53] sm:$0x3f] }
 0x1a9   : > { %4029 = vmatmul.mubr.msk.bf16.gmra.mrb[108].mxu0 %vm1766_vm6, %v1797_v61  ;;  %4036 = vmatprep.mubr.msk.bf16.mxu1 %vm4336_vm1, %v4335_v1  ;;  %v2166_v27 = vpack.c.bf16 %v2161_v46, %v2160_v53  ;;  %v2289_v45 = vld [vmem:[#allocation2 + $0x43] sm:$0xff]  ;;  %v2420_v14 = vld [vmem:[#allocation2 + $0x4c] sm:$0xff]  ;;  %v2554_v37 = vpack.c.bf16 %v2418_v17, %v2417_v39  ;;  %v2550_v55 = vld [vmem:[#allocation2 + $0x54] sm:$0xff] }
 0x1aa   : > { %4060 = vmatprep.mubr.msk.bf16.mxu0 %vm4336_vm1, %v4335_v1  ;;  %v2419_v16 = vld [vmem:[#allocation2 + $0x44] sm:$0xff]  ;;  %v2295_v61 = vpack.c.bf16 %v2289_v45, %v2288_v7  ;;  %v2679_v53 = vld [vmem:[#allocation2 + $0x4d] sm:$0xff]  ;;  %v2680_v50 = vld [vmem:[#allocation2 + $0x55] sm:$0xff] }
 0x1ab   : > { %v2425_v21 = vpack.c.bf16 %v2419_v16, %v2418_v17  ;;  %v2806_v39 = vld [vmem:[#allocation2 + $0x36] sm:$0xff]  ;;  %v2809_v12 = vld [vmem:[#allocation2 + $0x4e] sm:$0xff]  ;;  %v2811_v7 = vld [vmem:[#allocation2 + $0x5e] sm:$0x3f] }
 0x1ac   : > { %v4322_v17 = vld [vmem:[%s4426_s24 + $0xb0] sm:$0x7f]  }
 0x1b0   : > { %4037 = vmatmul.mubr.msk.bf16.vlgmr.msra.gmra.mrb[108].mxu1 %vm1766_vm6, %v2032_v26  ;;  %v2290_v26 = vld [vmem:[#allocation2 + $0x4b] sm:$0xff] }
 0x1b1   : > { %4061 = vmatmul.mubr.msk.bf16.vlgmr.msra.gmra.mrb[112].mxu0 %vm1766_vm6, %v2162_v28  ;;  %4081 = vmatpush3.bf16.msra.mxu1 %v4308_v23  ;;  %v2421_v23 = vld [vmem:[#allocation2 + $0x54] sm:$0x3f]  ;;  %v2296_v28 = vpack.c.bf16 %v2291_v22, %v2290_v26 }
 0x1b2   : > { %4040 = vmatprep.mubr.msk.bf16.mxu1 %vm4336_vm1, %v4335_v1  ;;  %4064 = vmatprep.mubr.msk.bf16.mxu0 %vm4336_vm1, %v4335_v1 }
 0x1b3   : > { %4082 = vmatprep.subr.bf16.mxu1 %v4335_v1  ;;  %4105 = vmatpush3.bf16.msra.mxu0 %v4310_v13  ;;  %v2426_v13 = vpack.c.bf16 %v2421_v23, %v2420_v14 }
 0x1b4   : > { %4106 = vmatprep.subr.bf16.mxu0 %v4335_v1 }
 0x1b5   : > { %4083 = vmatpush3.bf16.msra.mxu1 %v4309_v29  ;;  %v2673_v29 = vld [vmem:[#allocation2 + $0x1d] sm:$0xff] }
 0x1b6   : > { %4128 = vmatprep.subr.bf16.mxu1 %v4335_v1 }
 0x1b7   : > { %4107 = vmatpush3.bf16.msra.mxu0 %v4311_v34  ;;  %v3172_v34 = vld [vmem:[%s5232_s6] sm:$0xf] }
 0x1b8   : > { %4041 = vmatmul.mubr.msk.bf16.gmra.mrb[112].mxu1 %vm1766_vm6, %v2033_v19  ;;  %4152 = vmatprep.subr.bf16.mxu0 %v4335_v1  ;;  %v2552_v19 = vpack.c.bf16 %v2414_v63, %v4894_v54  ;;  %v3221_v35 = vsel %vm436_vm0, %v3172_v34, 0  ;;  %v2551_v54 = vld [vmem:[#allocation2 + $0x5c] sm:$0x3f]  ;;  %v2804_v63 = vld [vmem:[#allocation2 + $0x26] sm:$0xff] }
 0x1b9   : > { %4065 = vmatmul.mubr.msk.bf16.gmra.mrb[116].mxu0 %vm1766_vm6, %v2163_v25  ;;  %4044 = vmatprep.mubr.msk.bf16.mxu1 %vm4336_vm1, %v4335_v1  ;;  %v2682_v25 = vpack.c.bf16 %v2673_v29, %v2672_v30 }
 0x1ba   : > { %4068 = vmatprep.mubr.msk.bf16.mxu0 %vm4336_vm1, %v4335_v1 }
 0x1c0   : > { %4045 = vmatmul.mubr.msk.bf16.gmra.mrb[116].mxu1 %vm1766_vm6, %v2034_v38  ;;  %v2675_v38 = vld [vmem:[#allocation2 + $0x2d] sm:$0xff] }
 0x1c1   : > { %4069 = vmatmul.mubr.msk.bf16.gmra.mrb[120].mxu0 %vm1766_vm6, %v2164_v40  ;;  %4048 = vmatprep.mubr.msk.bf16.mxu1 %vm4336_vm1, %v4335_v1  ;;  %v2674_v40 = vld [vmem:[#allocation2 + $0x25] sm:$0xff] }
 0x1c2   : > { %4072 = vmatprep.mubr.msk.bf16.mxu0 %vm4336_vm1, %v4335_v1  ;;  %v2683_v49 = vpack.c.bf16 %v2675_v38, %v2674_v40 }
 0x1c8   : > { %4049 = vmatmul.mubr.msk.bf16.gmra.mrb[120].mxu1 %vm1766_vm6, %v2035_v41  ;;  %v2677_v41 = vld [vmem:[#allocation2 + $0x3d] sm:$0xff] }
 0x1c9   : > { %4073 = vmatmul.mubr.msk.bf16.gmra.mrb[124].mxu0 %vm1766_vm6, %v2165_v44  ;;  %4052 = vmatprep.mubr.msk.bf16.mxu1 %vm4336_vm1, %v4335_v1  ;;  %v2676_v44 = vld [vmem:[#allocation2 + $0x35] sm:$0xff] }
 0x1ca   : > { %4076 = vmatprep.mubr.msk.bf16.mxu0 %vm4336_vm1, %v4335_v1  ;;  %v2684_v46 = vpack.c.bf16 %v2677_v41, %v2676_v44 }
 0x1d0   : > { %4053 = vmatmul.mubr.msk.bf16.gmra.mrb[124].mxu1 %vm1766_vm6, %v2036_v48  ;;  %v2678_v48 = vld [vmem:[#allocation2 + $0x45] sm:$0xff] }
 0x1d1   : > { %4077 = vmatmul.mubr.msk.bf16.gmra.mrb[128].mxu0 %vm1766_vm6, %v2166_v27  ;;  %4084 = vmatprep.mubr.msk.bf16.mxu1 %vm4336_vm1, %v4335_v1  ;;  %v2555_v27 = vpack.c.bf16 %v2420_v14, %v2419_v16  ;;  %v2685_v51 = vpack.c.bf16 %v2679_v53, %v2678_v48  ;;  %v2810_v16 = vld [vmem:[#allocation2 + $0x56] sm:$0xff] }
 0x1d2   : > { %4108 = vmatprep.mubr.msk.bf16.mxu0 %vm4336_vm1, %v4335_v1 }
 0x1d8   : > { %4085 = vmatmul.mubr.msk.bf16.vlgmr.msra.gmra.mrb[128].mxu1 %vm1766_vm6, %v2292_v56  ;;  %v2556_v56 = vpack.c.bf16 %v2551_v54, %v2550_v55 }
 0x1d9   : > { %4109 = vmatmul.mubr.msk.bf16.vlgmr.msra.gmra.mrb[132].mxu0 %vm1766_vm6, %v2422_v59  ;;  %4129 = vmatpush3.bf16.msra.mxu1 %v4312_v33  ;;  %v2681_v33 = vld [vmem:[#allocation2 + $0x5d] sm:$0x3f] }
 0x1da   : > { %4088 = vmatprep.mubr.msk.bf16.mxu1 %vm4336_vm1, %v4335_v1  ;;  %4112 = vmatprep.mubr.msk.bf16.mxu0 %vm4336_vm1, %v4335_v1  ;;  %v2686_v59 = vpack.c.bf16 %v2681_v33, %v2680_v50 }
 0x1db   : > { %4130 = vmatprep.subr.bf16.mxu1 %v4335_v1  ;;  %4153 = vmatpush3.bf16.msra.mxu0 %v4314_v62  ;;  %v2803_v62 = vld [vmem:[#allocation2 + $0x1e] sm:$0xff] }
 0x1dc   : > { %4154 = vmatprep.subr.bf16.mxu0 %v4335_v1  ;;  %v2812_v0 = vpack.c.bf16 %v2803_v62, %v2802_v58 }
 0x1dd   : > { %4131 = vmatpush3.bf16.msra.mxu1 %v4313_v52  ;;  %v4318_v52 = vld [vmem:[%s4426_s24 + $0x90] sm:$0xff]  }
 0x1de   : > { %4176 = vmatprep.subr.bf16.mxu1 %v4335_v1 }
 0x1df   : > { %4155 = vmatpush3.bf16.msra.mxu0 %v4315_v3  ;;  %v2805_v3 = vld [vmem:[#allocation2 + $0x2e] sm:$0xff] }
 0x1e0   : > { %4089 = vmatmul.mubr.msk.bf16.gmra.mrb[132].mxu1 %vm1766_vm6, %v2293_v6  ;;  %4216 = vmatprep.subr.bf16.mxu0 %v4335_v1  ;;  %v2813_v6 = vpack.c.bf16 %v2805_v3, %v2804_v63 }
 0x1e1   : > { %4113 = vmatmul.mubr.msk.bf16.gmra.mrb[136].mxu0 %vm1766_vm6, %v2423_v10  ;;  %4092 = vmatprep.mubr.msk.bf16.mxu1 %vm4336_vm1, %v4335_v1  ;;  %v2807_v10 = vld [vmem:[#allocation2 + $0x3e] sm:$0xff] }
 0x1e2   : > { %4116 = vmatprep.mubr.msk.bf16.mxu0 %vm4336_vm1, %v4335_v1  ;;  %v2814_v57 = vpack.c.bf16 %v2807_v10, %v2806_v39 }
 0x1e8   : > { %4093 = vmatmul.mubr.msk.bf16.gmra.mrb[136].mxu1 %vm1766_vm6, %v2294_v11  ;;  %v4321_v11 = vld [vmem:[%s4426_s24 + $0xa8] sm:$0xff]  }
 0x1e9   : > { %4117 = vmatmul.mubr.msk.bf16.gmra.mrb[140].mxu0 %vm1766_vm6, %v2424_v5  ;;  %4096 = vmatprep.mubr.msk.bf16.mxu1 %vm4336_vm1, %v4335_v1  ;;  %v2808_v5 = vld [vmem:[#allocation2 + $0x46] sm:$0xff] }
 0x1ea   : > { %4120 = vmatprep.mubr.msk.bf16.mxu0 %vm4336_vm1, %v4335_v1  ;;  %v2815_v45 = vpack.c.bf16 %v2809_v12, %v2808_v5 }
 0x1f0   : > { %4097 = vmatmul.mubr.msk.bf16.gmra.mrb[140].mxu1 %vm1766_vm6, %v2295_v61  ;;  %v2816_v61 = vpack.c.bf16 %v2811_v7, %v2810_v16 }
 0x1f1   : > { %4121 = vmatmul.mubr.msk.bf16.gmra.mrb[144].mxu0 %vm1766_vm6, %v2425_v21  ;;  %4100 = vmatprep.mubr.msk.bf16.mxu1 %vm4336_vm1, %v4335_v1 }
 0x1f2   : > { %4124 = vmatprep.mubr.msk.bf16.mxu0 %vm4336_vm1, %v4335_v1 }
 0x1f8   : > { %4101 = vmatmul.mubr.msk.bf16.gmra.mrb[144].mxu1 %vm1766_vm6, %v2296_v28 }
 0x1f9   : > { %4125 = vmatmul.mubr.msk.bf16.gmra.mrb[148].mxu0 %vm1766_vm6, %v2426_v13  ;;  %4132 = vmatprep.mubr.msk.bf16.mxu1 %vm4336_vm1, %v4335_v1 }
 0x1fa   : > { %4156 = vmatprep.mubr.msk.bf16.mxu0 %vm4336_vm1, %v4335_v1 }
 0x200   : > { %4133 = vmatmul.mubr.msk.bf16.vlgmr.msra.gmra.mrb[148].mxu1 %vm1766_vm6, %v2552_v19 }
 0x201   : > { %4157 = vmatmul.mubr.msk.bf16.vlgmr.msra.gmra.mrb[152].mxu0 %vm1766_vm6, %v2682_v25  ;;  %4177 = vmatpush3.bf16.msra.mxu1 %v4316_v32 }
 0x202   : > { %4136 = vmatprep.mubr.msk.bf16.mxu1 %vm4336_vm1, %v4335_v1  ;;  %4160 = vmatprep.mubr.msk.bf16.mxu0 %vm4336_vm1, %v4335_v1 }
 0x203   : > { %4178 = vmatprep.subr.bf16.mxu1 %v4335_v1  ;;  %4217 = vmatpush3.bf16.msra.mxu0 %v3221_v35 }
 0x205   : > { %4179 = vmatpush3.bf16.msra.mxu1 %v4317_v36 }
 0x208   : > { %4137 = vmatmul.mubr.msk.bf16.gmra.mrb[152].mxu1 %vm1766_vm6, %v2553_v31 }
 0x209   : > { %4161 = vmatmul.mubr.msk.bf16.gmra.mrb[156].mxu0 %vm1766_vm6, %v2683_v49  ;;  %4140 = vmatprep.mubr.msk.bf16.mxu1 %vm4336_vm1, %v4335_v1 }
 0x20a   : > { %4164 = vmatprep.mubr.msk.bf16.mxu0 %vm4336_vm1, %v4335_v1 }
 0x210   : > { %4141 = vmatmul.mubr.msk.bf16.gmra.mrb[156].mxu1 %vm1766_vm6, %v2554_v37 }
 0x211   : > { %4165 = vmatmul.mubr.msk.bf16.gmra.mrb[160].mxu0 %vm1766_vm6, %v2684_v46  ;;  %4144 = vmatprep.mubr.msk.bf16.mxu1 %vm4336_vm1, %v4335_v1 }
 0x212   : > { %4168 = vmatprep.mubr.msk.bf16.mxu0 %vm4336_vm1, %v4335_v1 }
 0x218   : > { %4145 = vmatmul.mubr.msk.bf16.gmra.mrb[160].mxu1 %vm1766_vm6, %v2555_v27 }
 0x219   : > { %4169 = vmatmul.mubr.msk.bf16.gmra.mrb[164].mxu0 %vm1766_vm6, %v2685_v51  ;;  %4148 = vmatprep.mubr.msk.bf16.mxu1 %vm4336_vm1, %v4335_v1 }
 0x21a   : > { %4172 = vmatprep.mubr.msk.bf16.mxu0 %vm4336_vm1, %v4335_v1 }
 0x220   : > { %4149 = vmatmul.mubr.msk.bf16.gmra.mrb[164].mxu1 %vm1766_vm6, %v2556_v56 }
 0x221   : > { %4173 = vmatmul.mubr.msk.bf16.gmra.mrb[168].mxu0 %vm1766_vm6, %v2686_v59  ;;  %4180 = vmatprep.mubr.msk.bf16.mxu1 %vm4336_vm1, %v4335_v1 }
 0x222   : > { %4218 = vmatprep.mubr.msk.bf16.mxu0 %vm4336_vm1, %v4335_v1 }
 0x228   : > { %4181 = vmatmul.mubr.msk.bf16.vlgmr.msra.gmra.mrb[168].mxu1 %vm1766_vm6, %v2812_v0 }
 0x229   : > { %4219 = vmatmul.mubr.msk.bf16.vlgmr.msra.gmra.mrb[172].mxu0 %vm420_vm2, %v4318_v52  ;;  %4184 = vmatprep.mubr.msk.bf16.mxu1 %vm4336_vm1, %v4335_v1 }
 0x22a   : > { %4222 = vmatprep.mubr.msk.bf16.mxu0 %vm4336_vm1, %v4335_v1 }
 0x230   : > { %4185 = vmatmul.mubr.msk.bf16.gmra.mrb[172].mxu1 %vm1766_vm6, %v2813_v6 }
 0x231   : > { %4223 = vmatmul.mubr.msk.bf16.gmra.mrb[176].mxu0 %vm420_vm2, %v4319_v60  ;;  %4188 = vmatprep.mubr.msk.bf16.mxu1 %vm4336_vm1, %v4335_v1 }
 0x232   : > { %4226 = vmatprep.mubr.msk.bf16.mxu0 %vm4336_vm1, %v4335_v1 }
 0x238   : > { %4189 = vmatmul.mubr.msk.bf16.gmra.mrb[176].mxu1 %vm1766_vm6, %v2814_v57 }
 0x239   : > { %4227 = vmatmul.mubr.msk.bf16.gmra.mrb[180].mxu0 %vm420_vm2, %v4320_v2  ;;  %4192 = vmatprep.mubr.msk.bf16.mxu1 %vm4336_vm1, %v4335_v1 }
 0x23a   : > { %4230 = vmatprep.mubr.msk.bf16.mxu0 %vm4336_vm1, %v4335_v1 }
 0x240   : > { %4193 = vmatmul.mubr.msk.bf16.gmra.mrb[180].mxu1 %vm1766_vm6, %v2815_v45 }
 0x241   : > { %4231 = vmatmul.mubr.msk.bf16.gmra.mrb[184].mxu0 %vm420_vm2, %v4321_v11  ;;  %4196 = vmatprep.mubr.msk.bf16.mxu1 %vm4336_vm1, %v4335_v1 }
 0x242   : > { %4234 = vmatprep.mubr.msk.bf16.mxu0 %vm4336_vm1, %v4335_v1 }
 0x248   : > { %4197 = vmatmul.mubr.msk.bf16.gmra.mrb[184].mxu1 %vm1766_vm6, %v2816_v61 }
 0x249   : > { %4235 = vmatmul.mubr.msk.bf16.gmra.mrb[188].mxu0 %vm420_vm2, %v4322_v17  ;;  %4208 = vmatprep.mubr.msk.f32.mxu1 %vm4336_vm1, %v4335_v1 }
 0x25b   : > { %v1883_v21 = vpop.f32.mrb[88].mxu1 }
 0x25c   : > { %v1983_v22 = vpop.f32.mrb[92].mxu0  ;;  %v3990_v23 = vpop.f32.mrb[89].mxu1 }
 0x25d   : > { %v1984_v14 = vadd.f32 %v1983_v22, %v1883_v21  ;;  %v4014_v26 = vpop.f32.mrb[93].mxu0  ;;  %v1886_v28 = vpop.f32.mrb[90].mxu1 }
 0x25e   : > { %v1986_v13 = vpop.f32.mrb[94].mxu0  ;;  %v3991_v30 = vpop.f32.mrb[91].mxu1 }
 0x25f   : > { %v1987_v29 = vadd.f32 %v1986_v13, %v1886_v28  ;;  %v4015_v32 = vpop.f32.mrb[95].mxu0 }
 0x263   : > { %v1891_v34 = vpop.f32.mrb[92].mxu1 }
 0x264   : > { %v1991_v19 = vpop.f32.mrb[96].mxu0  ;;  %v3994_v35 = vpop.f32.mrb[93].mxu1 }
 0x265   : > { %v1992_v25 = vadd.f32 %v1991_v19, %v1891_v34  ;;  %v4018_v36 = vpop.f32.mrb[97].mxu0  ;;  %v1894_v38 = vpop.f32.mrb[94].mxu1 }
 0x266   : > { %v1994_v40 = vpop.f32.mrb[98].mxu0  ;;  %v3995_v49 = vpop.f32.mrb[95].mxu1 }
 0x267   : > { %v1995_v31 = vadd.f32 %v1994_v40, %v1894_v38  ;;  %v4019_v41 = vpop.f32.mrb[99].mxu0 }
 0x26b   : > { %v1899_v44 = vpop.f32.mrb[96].mxu1 }
 0x26c   : > { %v1999_v37 = vpop.f32.mrb[100].mxu0  ;;  %v3998_v53 = vpop.f32.mrb[97].mxu1 }
 0x26d   : > { %v2000_v46 = vadd.f32 %v1999_v37, %v1899_v44  ;;  %v4022_v48 = vpop.f32.mrb[101].mxu0  ;;  %v1902_v27 = vpop.f32.mrb[98].mxu1 }
 0x26e   : > { %v2002_v51 = vpop.f32.mrb[102].mxu0  ;;  %v3999_v55 = vpop.f32.mrb[99].mxu1 }
 0x26f   : > { %v2003_v54 = vadd.f32 %v2002_v51, %v1902_v27  ;;  %v4023_v50 = vpop.f32.mrb[103].mxu0 }
 0x273   : > { %v1907_v33 = vpop.f32.mrb[100].mxu1 }
 0x274   : > { %v2007_v56 = vpop.f32.mrb[104].mxu0  ;;  %v4002_v62 = vpop.f32.mrb[101].mxu1 }
 0x275   : > { %v5022_v59 = vadd.f32 %v2007_v56, %v1907_v33  ;;  %v4026_v52 = vpop.f32.mrb[105].mxu0  ;;  %v1910_v58 = vpop.f32.mrb[102].mxu1  ;;  %v4338_v33 = vmov 0.0|0.0   ;;  %v2985_v62 = vld [vmem:[%s5234_s8] sm:$0xff] }
 0x276   : > { %v2010_v0 = vpop.f32.mrb[106].mxu0  ;;  %v4003_v60 = vpop.f32.mrb[103].mxu1  ;;  %4238 = vmatprep.subr.bf16.mxu1 %v4338_v33 }
 0x277   : > { %v5024_v3 = vadd.f32 %v2010_v0, %v1910_v58  ;;  %v4027_v63 = vpop.f32.mrb[107].mxu0 }
 0x27b   : > { %v1915_v6 = vpop.f32.mrb[104].mxu1 }
 0x27c   : > { %v2015_v10 = vpop.f32.mrb[108].mxu0  ;;  %v4006_v39 = vpop.f32.mrb[105].mxu1 }
 0x27d   : > { %v5026_v2 = vadd.f32 %v2015_v10, %v1915_v6  ;;  %v4030_v57 = vpop.f32.mrb[109].mxu0  ;;  %v1918_v12 = vpop.f32.mrb[106].mxu1 }
 0x27e   : > { %v2018_v11 = vpop.f32.mrb[110].mxu0  ;;  %v4007_v45 = vpop.f32.mrb[107].mxu1 }
 0x27f   : > { %v5028_v5 = vadd.f32 %v2018_v11, %v1918_v12  ;;  %v4031_v16 = vpop.f32.mrb[111].mxu0 }
 0x283   : > { %v2103_v7 = vpop.f32.mrb[108].mxu1 }
 0x284   : > { %v2233_v17 = vpop.f32.mrb[112].mxu0  ;;  %v2142_v61 = vadd.f32 %v2103_v7, %v1984_v14  ;;  %v4038_v21 = vpop.f32.mrb[109].mxu1 }
 0x285   : > { %v4062_v22 = vpop.f32.mrb[113].mxu0  ;;  %v2106_v23 = vpop.f32.mrb[110].mxu1 }
 0x286   : > { %v2236_v26 = vpop.f32.mrb[114].mxu0  ;;  %v2272_v28 = vadd.f32 %v2233_v17, %v2142_v61  ;;  %v2143_v13 = vadd.f32 %v2106_v23, %v1987_v29  ;;  %v4039_v30 = vpop.f32.mrb[111].mxu1 }
 0x287   : > { %v4063_v32 = vpop.f32.mrb[115].mxu0 }
 0x288   : > { %v5030_v34 = vadd.f32 %v2236_v26, %v2143_v13 }
 0x28b   : > { %v2111_v19 = vpop.f32.mrb[112].mxu1 }
 0x28c   : > { %v2241_v35 = vpop.f32.mrb[116].mxu0  ;;  %v2144_v36 = vadd.f32 %v2111_v19, %v1992_v25  ;;  %v4042_v38 = vpop.f32.mrb[113].mxu1 }
 0x28d   : > { %v4066_v40 = vpop.f32.mrb[117].mxu0  ;;  %v2114_v49 = vpop.f32.mrb[114].mxu1 }
 0x28e   : > { %v2244_v41 = vpop.f32.mrb[118].mxu0  ;;  %v5032_v44 = vadd.f32 %v2241_v35, %v2144_v36  ;;  %v2145_v14 = vadd.f32 %v2114_v49, %v1995_v31  ;;  %v4043_v37 = vpop.f32.mrb[115].mxu1  ;;  %v2986_v31 = vld [vmem:[%s5234_s8 + $0x8] sm:$0xff] }
 0x28f   : > { %v4067_v53 = vpop.f32.mrb[119].mxu0 }
 0x290   : > { %v5034_v48 = vadd.f32 %v2244_v41, %v2145_v14 }
 0x293   : > { %v2119_v27 = vpop.f32.mrb[116].mxu1 }
 0x294   : > { %v2249_v29 = vpop.f32.mrb[120].mxu0  ;;  %v2146_v51 = vadd.f32 %v2119_v27, %v2000_v46  ;;  %v4046_v55 = vpop.f32.mrb[117].mxu1  ;;  %v4239_v46 = vpack.c.bf16 %v2986_v31, %v2985_v62 }
 0x295   : > { %v4070_v50 = vpop.f32.mrb[121].mxu0  ;;  %v2122_v56 = vpop.f32.mrb[118].mxu1 }
 0x296   : > { %v2252_v25 = vpop.f32.mrb[122].mxu0  ;;  %v5042_v52 = vadd.f32 %v2249_v29, %v2146_v51  ;;  %v2147_v58 = vadd.f32 %v2122_v56, %v2003_v54  ;;  %v4047_v0 = vpop.f32.mrb[119].mxu1  ;;  %4240 = vmatpush3.bf16.msra.mxu1 %v4239_v46 }
 0x297   : > { %v4071_v60 = vpop.f32.mrb[123].mxu0  ;;  %4241 = vmatprep.subr.bf16.mxu1 %v4338_v33 }
 0x298   : > { %v5044_v63 = vadd.f32 %v2252_v25, %v2147_v58 }
 0x29b   : > { %v2127_v6 = vpop.f32.mrb[120].mxu1 }
 0x29c   : > { %v2257_v10 = vpop.f32.mrb[124].mxu0  ;;  %v2148_v39 = vadd.f32 %v2127_v6, %v5022_v59  ;;  %v4050_v57 = vpop.f32.mrb[121].mxu1 }
 0x29d   : > { %v4074_v12 = vpop.f32.mrb[125].mxu0  ;;  %v2130_v11 = vpop.f32.mrb[122].mxu1 }
 0x29e   : > { %v2260_v45 = vpop.f32.mrb[126].mxu0  ;;  %v2278_v16 = vadd.f32 %v2257_v10, %v2148_v39  ;;  %v2149_v7 = vadd.f32 %v2130_v11, %v5024_v3  ;;  %v4051_v17 = vpop.f32.mrb[123].mxu1 }
 0x29f   : > { %v4075_v54 = vpop.f32.mrb[127].mxu0 }
 0x2a0   : > { %v2279_v61 = vadd.f32 %v2260_v45, %v2149_v7 }
 0x2a3   : > { %v2135_v21 = vpop.f32.mrb[124].mxu1 }
 0x2a4   : > { %v2265_v22 = vpop.f32.mrb[128].mxu0  ;;  %v2150_v23 = vadd.f32 %v2135_v21, %v5026_v2  ;;  %v4054_v26 = vpop.f32.mrb[125].mxu1 }
 0x2a5   : > { %v4078_v13 = vpop.f32.mrb[129].mxu0  ;;  %v2138_v30 = vpop.f32.mrb[126].mxu1 }
 0x2a6   : > { %v2268_v32 = vpop.f32.mrb[130].mxu0  ;;  %v2280_v19 = vadd.f32 %v2265_v22, %v2150_v23  ;;  %v2151_v59 = vadd.f32 %v2138_v30, %v5028_v5  ;;  %v4055_v35 = vpop.f32.mrb[127].mxu1  ;;  %v2987_v5 = vld [vmem:[%s5234_s8 + $0x10] sm:$0xff] }
 0x2a7   : > { %v4079_v36 = vpop.f32.mrb[131].mxu0 }
 0x2a8   : > { %v2281_v38 = vadd.f32 %v2268_v32, %v2151_v59 }
 0x2ab   : > { %v2363_v40 = vpop.f32.mrb[128].mxu1 }
 0x2ac   : > { %v2493_v49 = vpop.f32.mrb[132].mxu0  ;;  %v2402_v3 = vadd.f32 %v2363_v40, %v2272_v28  ;;  %v4086_v41 = vpop.f32.mrb[129].mxu1  ;;  %v2988_v28 = vld [vmem:[%s5234_s8 + $0x18] sm:$0xff] }
 0x2ad   : > { %v4110_v14 = vpop.f32.mrb[133].mxu0  ;;  %v2366_v37 = vpop.f32.mrb[130].mxu1  ;;  %v4242_v31 = vpack.c.bf16 %v2988_v28, %v2987_v5 }
 0x2ae   : > { %v2496_v53 = vpop.f32.mrb[134].mxu0  ;;  %v2532_v27 = vadd.f32 %v2493_v49, %v2402_v3  ;;  %v2403_v2 = vadd.f32 %v2366_v37, %v5030_v34  ;;  %v4087_v29 = vpop.f32.mrb[131].mxu1 }
 0x2af   : > { %v4111_v51 = vpop.f32.mrb[135].mxu0  ;;  %4243 = vmatpush3.bf16.msra.mxu1 %v4242_v31 }
 0x2b0   : > { %v2533_v55 = vadd.f32 %v2496_v53, %v2403_v2  ;;  %4211 = vmatprep.subr.mxu1 %v4335_v1 }
 0x2b3   : > { %v2371_v50 = vpop.f32.mrb[132].mxu1 }
 0x2b4   : > { %v2501_v33 = vpop.f32.mrb[136].mxu0  ;;  %v2404_v56 = vadd.f32 %v2371_v50, %v5032_v44  ;;  %v4090_v25 = vpop.f32.mrb[133].mxu1 }
 0x2b5   : > { %v4114_v62 = vpop.f32.mrb[137].mxu0  ;;  %v2374_v58 = vpop.f32.mrb[134].mxu1 }
 0x2b6   : > { %v2504_v34 = vpop.f32.mrb[138].mxu0  ;;  %v2534_v0 = vadd.f32 %v2501_v33, %v2404_v56  ;;  %v2405_v60 = vadd.f32 %v2374_v58, %v5034_v48  ;;  %v4091_v46 = vpop.f32.mrb[135].mxu1 }
 0x2b7   : > { %v4115_v6 = vpop.f32.mrb[139].mxu0 }
 0x2b8   : > { %v2535_v10 = vadd.f32 %v2504_v34, %v2405_v60 }
 0x2bb   : > { %v2379_v39 = vpop.f32.mrb[136].mxu1 }
 0x2bc   : > { %v2509_v57 = vpop.f32.mrb[140].mxu0  ;;  %v2406_v12 = vadd.f32 %v2379_v39, %v5042_v52  ;;  %v4094_v11 = vpop.f32.mrb[137].mxu1 }
 0x2bd   : > { %v4118_v44 = vpop.f32.mrb[141].mxu0  ;;  %v2382_v45 = vpop.f32.mrb[138].mxu1 }
 0x2be   : > { %v2512_v7 = vpop.f32.mrb[142].mxu0  ;;  %v2536_v17 = vadd.f32 %v2509_v57, %v2406_v12  ;;  %v2407_v54 = vadd.f32 %v2382_v45, %v5044_v63  ;;  %v4095_v21 = vpop.f32.mrb[139].mxu1 }
 0x2bf   : > { %v4119_v22 = vpop.f32.mrb[143].mxu0 }
 0x2c0   : > { %v2537_v48 = vadd.f32 %v2512_v7, %v2407_v54 }
 0x2c3   : > { %v2387_v23 = vpop.f32.mrb[140].mxu1 }
 0x2c4   : > { %v2517_v26 = vpop.f32.mrb[144].mxu0  ;;  %v2408_v13 = vadd.f32 %v2387_v23, %v2278_v16  ;;  %v4098_v30 = vpop.f32.mrb[141].mxu1 }
 0x2c5   : > { %v4122_v32 = vpop.f32.mrb[145].mxu0  ;;  %v2390_v59 = vpop.f32.mrb[142].mxu1 }
 0x2c6   : > { %v2520_v35 = vpop.f32.mrb[146].mxu0  ;;  %v2538_v36 = vadd.f32 %v2517_v26, %v2408_v13  ;;  %v2409_v40 = vadd.f32 %v2390_v59, %v2279_v61  ;;  %v4099_v52 = vpop.f32.mrb[143].mxu1 }
 0x2c7   : > { %v4123_v49 = vpop.f32.mrb[147].mxu0 }
 0x2c8   : > { %v2539_v3 = vadd.f32 %v2520_v35, %v2409_v40 }
 0x2cb   : > { %v2395_v41 = vpop.f32.mrb[144].mxu1 }
 0x2cc   : > { %v2525_v14 = vpop.f32.mrb[148].mxu0  ;;  %v2410_v37 = vadd.f32 %v2395_v41, %v2280_v19  ;;  %v4102_v53 = vpop.f32.mrb[145].mxu1 }
 0x2cd   : > { %v4126_v63 = vpop.f32.mrb[149].mxu0  ;;  %v2398_v2 = vpop.f32.mrb[146].mxu1 }
 0x2ce   : > { %v2528_v29 = vpop.f32.mrb[150].mxu0  ;;  %v2540_v51 = vadd.f32 %v2525_v14, %v2410_v37  ;;  %v2411_v50 = vadd.f32 %v2398_v2, %v2281_v38  ;;  %v4103_v33 = vpop.f32.mrb[147].mxu1 }
 0x2cf   : > { %v4127_v16 = vpop.f32.mrb[151].mxu0 }
 0x2d0   : > { %v2541_v5 = vadd.f32 %v2528_v29, %v2411_v50 }
 0x2d3   : > { %v2623_v28 = vpop.f32.mrb[148].mxu1 }
 0x2d4   : > { %v2753_v56 = vpop.f32.mrb[152].mxu0  ;;  %v2662_v25 = vadd.f32 %v2623_v28, %v2532_v27  ;;  %v4134_v62 = vpop.f32.mrb[149].mxu1 }
 0x2d5   : > { %v4158_v61 = vpop.f32.mrb[153].mxu0  ;;  %v2626_v31 = vpop.f32.mrb[150].mxu1 }
 0x2d6   : > { %v2756_v58 = vpop.f32.mrb[154].mxu0  ;;  %v2792_v34 = vadd.f32 %v2753_v56, %v2662_v25  ;;  %v2663_v60 = vadd.f32 %v2626_v31, %v2533_v55  ;;  %v4135_v46 = vpop.f32.mrb[151].mxu1 }
 0x2d7   : > { %v4159_v19 = vpop.f32.mrb[155].mxu0 }
 0x2d8   : > { %v2793_v6 = vadd.f32 %v2756_v58, %v2663_v60 }
 0x2db   : > { %v2631_v39 = vpop.f32.mrb[152].mxu1 }
 0x2dc   : > { %v2761_v57 = vpop.f32.mrb[156].mxu0  ;;  %v2664_v12 = vadd.f32 %v2631_v39, %v2534_v0  ;;  %v4138_v11 = vpop.f32.mrb[153].mxu1 }
 0x2dd   : > { %v4162_v38 = vpop.f32.mrb[157].mxu0  ;;  %v2634_v44 = vpop.f32.mrb[154].mxu1 }
 0x2de   : > { %v2764_v45 = vpop.f32.mrb[158].mxu0  ;;  %v2794_v7 = vadd.f32 %v2761_v57, %v2664_v12  ;;  %v2665_v54 = vadd.f32 %v2634_v44, %v2535_v10  ;;  %v4139_v21 = vpop.f32.mrb[155].mxu1 }
 0x2df   : > { %v4163_v27 = vpop.f32.mrb[159].mxu0 }
 0x2e0   : > { %v2795_v22 = vadd.f32 %v2764_v45, %v2665_v54 }
 0x2e3   : > { %v2639_v23 = vpop.f32.mrb[156].mxu1 }
 0x2e4   : > { %v2769_v26 = vpop.f32.mrb[160].mxu0  ;;  %v2666_v13 = vadd.f32 %v2639_v23, %v2536_v17  ;;  %v4142_v30 = vpop.f32.mrb[157].mxu1 }
 0x2e5   : > { %v4166_v55 = vpop.f32.mrb[161].mxu0  ;;  %v2642_v32 = vpop.f32.mrb[158].mxu1 }
 0x2e6   : > { %v2772_v59 = vpop.f32.mrb[162].mxu0  ;;  %v2796_v35 = vadd.f32 %v2769_v26, %v2666_v13  ;;  %v2667_v40 = vadd.f32 %v2642_v32, %v2537_v48  ;;  %v4143_v52 = vpop.f32.mrb[159].mxu1 }
 0x2e7   : > { %v4167_v0 = vpop.f32.mrb[163].mxu0 }
 0x2e8   : > { %v5062_v49 = vadd.f32 %v2772_v59, %v2667_v40 }
 0x2eb   : > { %v2647_v41 = vpop.f32.mrb[160].mxu1 }
 0x2ec   : > { %v2777_v14 = vpop.f32.mrb[164].mxu0  ;;  %v2668_v37 = vadd.f32 %v2647_v41, %v2538_v36  ;;  %v4146_v10 = vpop.f32.mrb[161].mxu1 }
 0x2ed   : > { %v4170_v53 = vpop.f32.mrb[165].mxu0  ;;  %v2650_v63 = vpop.f32.mrb[162].mxu1 }
 0x2ee   : > { %v2780_v2 = vpop.f32.mrb[166].mxu0  ;;  %v5064_v29 = vadd.f32 %v2777_v14, %v2668_v37  ;;  %v2669_v17 = vadd.f32 %v2650_v63, %v2539_v3  ;;  %v4147_v50 = vpop.f32.mrb[163].mxu1 }
 0x2ef   : > { %v4171_v33 = vpop.f32.mrb[167].mxu0 }
 0x2f0   : > { %v5066_v16 = vadd.f32 %v2780_v2, %v2669_v17 }
 0x2f3   : > { %v2655_v28 = vpop.f32.mrb[164].mxu1 }
 0x2f4   : > { %v2785_v48 = vpop.f32.mrb[168].mxu0  ;;  %v2670_v56 = vadd.f32 %v2655_v28, %v2540_v51  ;;  %v4150_v25 = vpop.f32.mrb[165].mxu1 }
 0x2f5   : > { %v4174_v62 = vpop.f32.mrb[169].mxu0  ;;  %v2658_v61 = vpop.f32.mrb[166].mxu1 }
 0x2f6   : > { %v2788_v31 = vpop.f32.mrb[170].mxu0  ;;  %v5068_v58 = vadd.f32 %v2785_v48, %v2670_v56  ;;  %v2671_v36 = vadd.f32 %v2658_v61, %v2541_v5  ;;  %v4151_v60 = vpop.f32.mrb[167].mxu1  ;;  %v5079_v5 = vld [vmem:[%s5230_s4] ss:$0 sm:$0xff] }
 0x2f7   : > { %v4175_v46 = vpop.f32.mrb[171].mxu0 }
 0x2f8   : > { %v5070_v19 = vadd.f32 %v2788_v31, %v2671_v36 }
 0x2fb   : > { %v2883_v39 = vpop.f32.mrb[168].mxu1 }
 0x2fc   : > { %v5072_v3 = vpop.f32.mrb[172].mxu0  ;;  %v2922_v57 = vadd.f32 %v2883_v39, %v2792_v34  ;;  %v4182_v12 = vpop.f32.mrb[169].mxu1 }
 0x2fd   : > { %v4220_v11 = vpop.f32.mrb[173].mxu0  ;;  %v2886_v38 = vpop.f32.mrb[170].mxu1 }
 0x2fe   : > { %v5074_v44 = vpop.f32.mrb[174].mxu0  ;;  %v2923_v51 = vadd.f32 %v2886_v38, %v2793_v6  ;;  %v4183_v45 = vpop.f32.mrb[171].mxu1  ;;  %v2939_v30 = vadd.f32 %v5079_v5, %v2922_v57 }
 0x2ff   : > { %v4221_v54 = vpop.f32.mrb[175].mxu0 }
 0x300   : > { %v2940_v23 = vadd.f32 %v5079_v5, %v2923_v51  ;;  %v5092_v41 = vmul.f32 %v2939_v30, %v4742_v9 }
 0x302   : > { %v5089_v0 = vmul.f32 %v2940_v23, %v4751_v24  ;;  %v2959_v17 = vsel %vm1766_vm6, %v5092_v41, 0.0 }
 0x303   : > { %v2891_v21 = vpop.f32.mrb[172].mxu1 }
 0x304   : > { %v5081_v27 = vpop.f32.mrb[176].mxu0  ;;  %v2924_v26 = vadd.f32 %v2891_v21, %v2794_v7  ;;  %v4186_v34 = vpop.f32.mrb[173].mxu1  ;;  %v2960_v53 = vsel %vm1766_vm6, %v5089_v0, 0.0 }
 0x305   : > { %v4224_v13 = vpop.f32.mrb[177].mxu0  ;;  %v2894_v55 = vpop.f32.mrb[174].mxu1  ;;  %v2961_v61 = vadd.f32 %v2960_v53, %v2959_v17 }
 0x306   : > { %v5085_v32 = vpop.f32.mrb[178].mxu0  ;;  %v2941_v6 = vadd.f32 %v5079_v5, %v2924_v26  ;;  %v2925_v59 = vadd.f32 %v2894_v55, %v2795_v22  ;;  %v4187_v40 = vpop.f32.mrb[175].mxu1 }
 0x307   : > { %v4225_v52 = vpop.f32.mrb[179].mxu0 }
 0x308   : > { %v5095_v7 = vmul.f32 %v2941_v6, %v4754_v20  ;;  %v2942_v14 = vadd.f32 %v5079_v5, %v2925_v59 }
 0x30a   : > { %v2962_v28 = vsel %vm1766_vm6, %v5095_v7, 0.0  ;;  %v5109_v48 = vmul.f32 %v2942_v14, %v4763_v43 }
 0x30b   : > { %v2899_v37 = vpop.f32.mrb[176].mxu1  ;;  %v2963_v60 = vadd.f32 %v2962_v28, %v2961_v61 }
 0x30c   : > { %v5098_v10 = vpop.f32.mrb[180].mxu0  ;;  %v2926_v22 = vadd.f32 %v2899_v37, %v2796_v35  ;;  %v4190_v63 = vpop.f32.mrb[177].mxu1  ;;  %v2964_v46 = vsel %vm1766_vm6, %v5109_v48, 0.0 }
 0x30d   : > { %v4228_v2 = vpop.f32.mrb[181].mxu0  ;;  %v2902_v50 = vpop.f32.mrb[178].mxu1  ;;  %v2965_v45 = vadd.f32 %v2964_v46, %v2963_v60 }
 0x30e   : > { %v5104_v33 = vpop.f32.mrb[182].mxu0  ;;  %v2943_v56 = vadd.f32 %v5079_v5, %v2926_v22  ;;  %v2927_v25 = vadd.f32 %v2902_v50, %v5062_v49  ;;  %v4191_v62 = vpop.f32.mrb[179].mxu1 }
 0x30f   : > { %v4229_v35 = vpop.f32.mrb[183].mxu0 }
 0x310   : > { %v5114_v31 = vmul.f32 %v2943_v56, %v4788_v15  ;;  %v2944_v36 = vadd.f32 %v5079_v5, %v2927_v25 }
 0x312   : > { %v2966_v12 = vsel %vm1766_vm6, %v5114_v31, 0.0  ;;  %v5124_v49 = vmul.f32 %v2944_v36, %v4795_v18 }
 0x313   : > { %v2907_v39 = vpop.f32.mrb[180].mxu1  ;;  %v2967_v30 = vadd.f32 %v2966_v12, %v2965_v45 }
 0x314   : > { %v5119_v57 = vpop.f32.mrb[184].mxu0  ;;  %v2928_v11 = vadd.f32 %v2907_v39, %v5064_v29  ;;  %v4194_v38 = vpop.f32.mrb[181].mxu1  ;;  %v2968_v55 = vsel %vm1766_vm6, %v5124_v49, 0.0 }
 0x315   : > { %v4232_v51 = vpop.f32.mrb[185].mxu0  ;;  %v2910_v54 = vpop.f32.mrb[182].mxu1  ;;  %v2969_v52 = vadd.f32 %v2968_v55, %v2967_v30 }
 0x316   : > { %v5127_v21 = vpop.f32.mrb[186].mxu0  ;;  %v2945_v23 = vadd.f32 %v5079_v5, %v2928_v11  ;;  %v2929_v26 = vadd.f32 %v2910_v54, %v5066_v16  ;;  %v4195_v34 = vpop.f32.mrb[183].mxu1 }
 0x317   : > { %v4233_v13 = vpop.f32.mrb[187].mxu0 }
 0x318   : > { %v5134_v6 = vmul.f32 %v2945_v23, %v4812_v42  ;;  %v2946_v29 = vadd.f32 %v5079_v5, %v2929_v26  ;;  %v3063_v23 = vld [vmem:[%s5235_s9] sm:$0x3] }
 0x31a   : > { %v2970_v59 = vsel %vm1766_vm6, %v5134_v6, 0.0  ;;  %v5140_v40 = vmul.f32 %v2946_v29, %v4815_v47 }
 0x31b   : > { %v2915_v14 = vpop.f32.mrb[184].mxu1  ;;  %v2971_v63 = vadd.f32 %v2970_v59, %v2969_v52 }
 0x31c   : > { %v3289_v16 = vpop.f32.mrb[188].mxu0  ;;  %v2930_v37 = vadd.f32 %v2915_v14, %v5068_v58  ;;  %v4198_v53 = vpop.f32.mrb[185].mxu1  ;;  %v2972_v50 = vsel %vm1766_vm6, %v5140_v40, 0.0  ;;  %v3148_v14 = vlaneseq }
 0x31d   : > { %v4236_v22 = vpop.f32.mrb[189].mxu0  ;;  %v2918_v2 = vpop.f32.mrb[186].mxu1  ;;  %v2973_v58 = vadd.f32 %v2972_v50, %v2971_v63 }
 0x31e   : > { %v3292_v17 = vpop.f32.mrb[190].mxu0  ;;  %v2947_v28 = vadd.f32 %v5079_v5, %v2930_v37  ;;  %v2931_v56 = vadd.f32 %v2918_v2, %v5070_v19  ;;  %v4199_v25 = vpop.f32.mrb[187].mxu1  ;;  %v3643_v37 = vld [vmem:[%s5233_s7] ss:$0 sm:$0xff]  ;;  %v3149_v53 = vshrl.u32 %v3148_v14, 7 }
 0x31f   : > { %v4237_v62 = vpop.f32.mrb[191].mxu0  ;;  %v3258_v22 = vadd.f32 %v3643_v37, %v5072_v3  ;;  %v3261_v63 = vadd.f32 %v3643_v37, %v5074_v44  ;;  %v3266_v2 = vadd.f32 %v3643_v37, %v5081_v27  ;;  %v3274_v50 = vadd.f32 %v3643_v37, %v5098_v10 }
 0x320   : > { %v5148_v35 = vmul.f32 %v2947_v28, %v4828_v4  ;;  %v2948_v61 = vadd.f32 %v5079_v5, %v2931_v56  ;;  %v3277_v28 = vadd.f32 %v3643_v37, %v5104_v33  ;;  %v3150_v56 = vsub.s32 0, %v3149_v53 }
 0x321   : > { %v3282_v25 = vadd.f32 %v3643_v37, %v5119_v57  ;;  %v3285_v62 = vadd.f32 %v3643_v37, %v5127_v21  ;;  %v3296_v3 = vmul.f32 %v3258_v22, %v4742_v9  ;;  %v3297_v44 = vmul.f32 %v3261_v63, %v4751_v24 }
 0x322   : > { %v2974_v36 = vsel %vm1766_vm6, %v5148_v35, 0.0  ;;  %v5154_v60 = vmul.f32 %v2948_v61, %v4831_v8  ;;  %v3290_v61 = vadd.f32 %v3643_v37, %v3289_v16  ;;  %v3298_v27 = vmul.f32 %v3266_v2, %v4754_v20 }
 0x323   : > { %v2975_v46 = vadd.f32 %v2974_v36, %v2973_v58  ;;  %v3293_v58 = vadd.f32 %v3643_v37, %v3292_v17  ;;  %v3300_v10 = vmul.f32 %v3274_v50, %v4788_v15  ;;  %v3301_v33 = vmul.f32 %v3277_v28, %v4795_v18 }
 0x324   : > { %v2976_v39 = vsel %vm1779_vm8, %v5154_v60, 0.0  ;;  %v3302_v57 = vmul.f32 %v3282_v25, %v4812_v42  ;;  %v3303_v21 = vmul.f32 %v3285_v62, %v4815_v47  ;;  %v3304_v16 = vmul.f32 %v3290_v61, %v4828_v4 }
 0x325   : > { %v2977_v12 = vadd.f32 %v2976_v39, %v2975_v46  ;;  %v3305_v17 = vmul.f32 %v3293_v58, %v4831_v8 }
 0x327   : > { %v2978_v19 = vrot.slane %v2977_v12, 4 }
 0x329   : > { %v2979_v11 = vadd.f32 %v2978_v19, %v2977_v12 }
 0x32b   : > { %v2980_v38 = vrot.slane %v2979_v11, 2 }
 0x32d   : > { %v2981_v51 = vadd.f32 %v2980_v38, %v2979_v11 }
 0x32f   : > { %v2982_v45 = vrot.slane %v2981_v51, 1 }
 0x331   : > { %v2983_v54 = vadd.f32 %v2982_v45, %v2981_v51 }
 0x333   : > { %v2984_v5 = vmul.f32 0.015625, %v2983_v54 }
 0x335   : > { %4209 = vmatmul.mubr.msk.f32.vlgmr.msra.gmra.mrb[188].mxu1 %vm1766_vm6, %v2984_v5 }
 0x336   : > { %4212 = vmatpush3.msk.msra.mxu1 %vm3068_vm9, %v3063_v23  ;;  %4213 = vmatprep.mubr.msk.f32.mxu1 %vm4336_vm1, %v4335_v1  ;;  %v3269_v1 = vadd.f32 %v3643_v37, %v5085_v32 }
 0x338   : > { %v3299_v32 = vmul.f32 %v3269_v1, %v4763_v43 }
 0x408   : > { %v3058_v26 = vpop.f32.mrb[188].mxu1 }
 0x409   : > { %v3062_v34 = vmax.f32 %v3058_v26, 0.0  ;;  %v4210_v13 = vpop.f32.mrb[189].mxu1 }
 0x40b   : > { %4214 = vmatmul.mubr.msk.f32.vlgmr.msra.gmra.mrb[190].mxu1 %vm3064_vm10, %v3062_v34 }
 0x4de   : > { %v3138_v30 = vpop.f32.mrb[190].mxu1 }
 0x4df   : > { %v3632_v55 = vmul.f32 -1.442695, %v3138_v30  ;;  %v4215_v29 = vpop.f32.mrb[191].mxu1 }
 0x4e1   : > { %4323 = vpow2.f32 %v3632_v55 }
 0x4eb   : > { %v4324_v59 = vpop.eup %4323 }
 0x4ec   : > { %v3145_v52 = vadd.f32 1.0, %v4324_v59 }
 0x4ee   : > { %4325 = vrcp.f32 %v3145_v52 }
 0x4f8   : > { %v4326_v36 = vpop.eup %4325 }
 0x4f9   : > { %v3151_v46 = vrot.slane %v4326_v36, %v3150_v56 }
 0x4fb   : > { %v3152_v9 = vmul.f32 %v3151_v46, %v5092_v41  ;;  %v3153_v24 = vmul.f32 %v3151_v46, %v5089_v0  ;;  %v3154_v20 = vmul.f32 %v3151_v46, %v5095_v7  ;;  %v3155_v43 = vmul.f32 %v3151_v46, %v5109_v48 }
 0x4fc   : > { %v3156_v15 = vmul.f32 %v3151_v46, %v5114_v31  ;;  %v3157_v18 = vmul.f32 %v3151_v46, %v5124_v49  ;;  %v3158_v42 = vmul.f32 %v3151_v46, %v5134_v6  ;;  %v3159_v47 = vmul.f32 %v3151_v46, %v5140_v40 }
 0x4fd   : > { %v3160_v4 = vmul.f32 %v3151_v46, %v5148_v35  ;;  %v3161_v8 = vmul.f32 %v3151_v46, %v5154_v60  ;;  %v3306_v39 = vadd.f32 %v3296_v3, %v3152_v9  ;;  %v3307_v41 = vadd.f32 %v3297_v44, %v3153_v24 }
 0x4fe   : > { %v3308_v12 = vadd.f32 %v3298_v27, %v3154_v20  ;;  %v3309_v0 = vadd.f32 %v3299_v32, %v3155_v43  ;;  %v3310_v19 = vadd.f32 %v3300_v10, %v3156_v15  ;;  %v3311_v7 = vadd.f32 %v3301_v33, %v3157_v18 }
 0x4ff   : > { %v3312_v48 = vadd.f32 %v3302_v57, %v3158_v42  ;;  %v3313_v31 = vadd.f32 %v3303_v21, %v3159_v47  ;;  %v3314_v49 = vadd.f32 %v3304_v16, %v3160_v4  ;;  %v3315_v6 = vadd.f32 %v3305_v17, %v3161_v8 }
 0x500   : > { %v3316_v40 = vmax.f32 %v3306_v39, 0.0  ;;  %v3317_v35 = vmax.f32 %v3307_v41, 0.0  ;;  %v3318_v60 = vmax.f32 %v3308_v12, 0.0  ;;  %v3319_v11 = vmax.f32 %v3309_v0, 0.0 }
 0x501   : > { %v3320_v38 = vmax.f32 %v3310_v19, 0.0  ;;  %v3321_v51 = vmax.f32 %v3311_v7, 0.0  ;;  %v3322_v45 = vmax.f32 %v3312_v48, 0.0  ;;  %v3323_v54 = vmax.f32 %v3313_v31, 0.0 }
 0x502   : > { %v3324_v5 = vmax.f32 %v3314_v49, 0.0  ;;  %v3325_v23 = vmax.f32 %v3315_v6, 0.0  ;;  %3326 = vst.msk [vmem:[%s5168_s26] sm:$0xff] %vm1766_vm6, %v3316_v40  ;;  %3327 = vst.msk [vmem:[%s5168_s26 + $0x8] sm:$0xff] %vm1766_vm6, %v3317_v35 }
 0x503   : > { %3328 = vst.msk [vmem:[%s5168_s26 + $0x10] sm:$0xff] %vm1766_vm6, %v3318_v60  ;;  %3329 = vst.msk [vmem:[%s5168_s26 + $0x18] sm:$0xff] %vm1766_vm6, %v3319_v11 }
 0x504   : > { %3330 = vst.msk [vmem:[%s5168_s26 + $0x20] sm:$0xff] %vm1766_vm6, %v3320_v38  ;;  %3331 = vst.msk [vmem:[%s5168_s26 + $0x28] sm:$0xff] %vm1766_vm6, %v3321_v51 }
 0x505   : > { %3332 = vst.msk [vmem:[%s5168_s26 + $0x30] sm:$0xff] %vm1766_vm6, %v3322_v45  ;;  %3333 = vst.msk [vmem:[%s5168_s26 + $0x38] sm:$0xff] %vm1766_vm6, %v3323_v54 }
 0x506   : > { %3334 = vst.msk [vmem:[%s5168_s26 + $0x40] sm:$0xff] %vm1766_vm6, %v3324_v5 }
 0x507   : > { %3335 = vst.msk [vmem:[%s5168_s26 + $0x48] sm:$0x3f] %vm1779_vm8, %v3325_v23 }
 0x508 PF: > { %s20_s13 = sadd.s32 1, %s4333_s13  }
 0x509   : > { %p17_p4 = scmp.ge.s32.totalorder %s20_s13, 4  }
 0x50b   :  { %19 = sbr.rel (!%p17_p4) target bundleno = 1 (0x1), region = 109 }

</bundles_post_ra>
